<compile_context>
chip_gen: v7x
topology: tpu7x:2x2x1
jax: 0.10.0
libtpu: 0.0.40
codegen_flags: <defaults>
</compile_context>

<pallas_src>
import functools

import jax
import jax.numpy as jnp
from jax.experimental import pallas as pl
from jax.experimental.pallas import tpu as pltpu

_SN_EPS = 1e-12  # PyTorch spectral_norm default eps


# ---------------------------------------------------------------------------
# Kernel 1: 1/sigma via one power iteration on the flattened weight.
# Problem is tiny (C_out x C_in*k*k) -> single un-gridded call, VPU/XLU only.
# ---------------------------------------------------------------------------
def _sn_inv_sigma_kernel(w_ref, u_ref, o_ref):
    w = w_ref[...]                                              # (C_out, K) f32
    u = u_ref[...]                                              # (C_out, 1) f32
    # v = normalize(W^T u)  (kept as a (1, K) row vector; no transposes needed)
    wtu = jnp.sum(w * u, axis=0, keepdims=True)                 # (1, K)
    v_nrm = jnp.sqrt(jnp.sum(wtu * wtu, axis=1, keepdims=True))
    v = wtu / jnp.maximum(v_nrm, _SN_EPS)
    # u_new = normalize(W v); sigma = u_new . (W v) = ||Wv||^2 / max(||Wv||, eps)
    wv = jnp.sum(w * v, axis=1, keepdims=True)                  # (C_out, 1)
    nsq = jnp.sum(wv * wv, axis=0, keepdims=True)               # (1, 1)
    sigma = nsq / jnp.maximum(jnp.sqrt(nsq), _SN_EPS)
    o_ref[...] = 1.0 / sigma


# ---------------------------------------------------------------------------
# Kernel 2: the convolution.  One grid step = one image.  Each of the k*k taps
# is a contiguous row slab of the flattened padded image; per tap we run a
# (rows, C_in) x (C_in, C_out_pad) MXU matmul accumulated in an f32 VMEM
# scratch, then fuse the spectral-norm scale (SMEM scalar) and bias.
# ---------------------------------------------------------------------------
def _make_sn_conv_kernel(tap_starts, rows):
    def kernel(x_ref, w_ref, b_ref, inv_sigma_ref, o_ref, acc_ref):
        acc_ref[...] = jnp.zeros_like(acc_ref)
        for t, s0 in enumerate(tap_starts):                     # static unroll over k*k taps
            slab = x_ref[0, s0:s0 + rows, :]                    # (rows, C_in) bf16, contiguous
            acc_ref[...] += jnp.dot(slab, w_ref[t],
                                    preferred_element_type=jnp.float32)
        inv_sigma = inv_sigma_ref[0, 0]                         # SMEM scalar: 1/sigma
        o_ref[0] = acc_ref[...] * inv_sigma + b_ref[...]        # conv(x, W)/sigma + bias
    return kernel


# ---------------------------------------------------------------------------
# Wrapper: NCHW in / NCHW out, PyTorch (O, I, kH, kW) weight layout.
# ---------------------------------------------------------------------------
def spectral_norm_conv2d(x, weight, bias, u, *, stride=1, padding=0):
    n, c_in, h, w_sp = x.shape
    c_out, c_in_w, kh, kw = weight.shape
    assert c_in_w == c_in and kh == kw, "square kernels, matching channels"
    k, s, p = kh, stride, padding

    # ---- 1/sigma from the raw f32 weight (PyTorch flattening W.reshape(C_out, -1))
    w2d = weight.reshape(c_out, c_in * k * k).astype(jnp.float32)
    inv_sigma = pl.pallas_call(
        _sn_inv_sigma_kernel,
        out_shape=jax.ShapeDtypeStruct((1, 1), jnp.float32),
    )(w2d, u.reshape(c_out, 1).astype(jnp.float32))

    # ---- conv geometry -------------------------------------------------------
    hp, wp = h + 2 * p, w_sp + 2 * p
    ho1, wo1 = hp - k + 1, wp - k + 1               # stride-1 output extent
    ho, wo = (hp - k) // s + 1, (wp - k) // s + 1   # requested (strided) extent
    rows = ho1 * wp                                 # per-image GEMM rows (includes
                                                    # wp - wo1 wrap columns, sliced off later)
    c_out_pad = ((c_out + 127) // 128) * 128        # lane-dense output channels

    # NCHW -> NHWC once, zero-pad, flatten spatial dims (free for contiguous
    # NHWC), add k-1 overrun rows so every tap slab stays in bounds, cast bf16.
    x_nhwc = jnp.transpose(x, (0, 2, 3, 1))
    x_flat = jnp.pad(x_nhwc, ((0, 0), (p, p), (p, p), (0, 0))).reshape(n, hp * wp, c_in)
    x_flat = jnp.pad(x_flat, ((0, 0), (0, k - 1), (0, 0))).astype(jnp.bfloat16)
    flat_len = hp * wp + k - 1

    # weight (C_out, C_in, kH, kW) -> (k*k, C_in, C_out_pad), zero-padded lanes, bf16
    w_taps = jnp.transpose(weight, (2, 3, 1, 0)).reshape(k * k, c_in, c_out)
    w_taps = jnp.pad(w_taps, ((0, 0), (0, 0), (0, c_out_pad - c_out))).astype(jnp.bfloat16)

    if bias is None:
        bias = jnp.zeros((c_out,), jnp.float32)
    b_row = jnp.pad(bias.astype(jnp.float32), (0, c_out_pad - c_out)).reshape(1, c_out_pad)

    tap_starts = tuple(ki * wp + kj for ki in range(k) for kj in range(k))
    kernel = _make_sn_conv_kernel(tap_starts, rows)

    flops = 2 * n * rows * (k * k * c_in) * c_out_pad
    bytes_accessed = (x_flat.size * 2 + w_taps.size * 2 + b_row.size * 4 + 4
                      + n * rows * c_out_pad * 4)

    y = pl.pallas_call(
        kernel,
        out_shape=jax.ShapeDtypeStruct((n, rows, c_out_pad), jnp.float32),
        grid=(n,),
        in_specs=[
            pl.BlockSpec((1, flat_len, c_in), lambda i: (i, 0, 0)),      # one image
            pl.BlockSpec((k * k, c_in, c_out_pad), lambda i: (0, 0, 0)),  # resident weight
            pl.BlockSpec((1, c_out_pad), lambda i: (0, 0)),               # resident bias row
            pl.BlockSpec(memory_space=pltpu.MemorySpace.SMEM),            # 1/sigma scalar
        ],
        out_specs=pl.BlockSpec((1, rows, c_out_pad), lambda i: (i, 0, 0)),
        scratch_shapes=[pltpu.VMEM((rows, c_out_pad), jnp.float32)],
        compiler_params=pltpu.CompilerParams(
            dimension_semantics=("parallel",),
            vmem_limit_bytes=32 * 1024 * 1024,
        ),
        cost_estimate=pl.CostEstimate(
            flops=flops, transcendentals=0, bytes_accessed=bytes_accessed),
    )(x_flat, w_taps, b_row, inv_sigma)

    # (N, rows, C_out_pad) -> (N, Ho1, Wp, C_out_pad); drop wrap columns,
    # subsample for stride, slice off lane padding, NHWC -> NCHW at the boundary.
    # TODO(synk): for stride > 1 this computes the stride-1 output and subsamples
    # (s^2 waste); a dedicated strided-tap kernel would avoid it.  For very large
    # images the per-image row block should additionally be tiled (with halos).
    y = y.reshape(n, ho1, wp, c_out_pad)
    y = y[:, :s * (ho - 1) + 1:s, :s * (wo - 1) + 1:s, :c_out]
    return jnp.transpose(y, (0, 3, 1, 2))


# ---------------------------------------------------------------------------
if __name__ == "__main__":
    key = jax.random.PRNGKey(0)
    k_x, k_w, k_b, k_u = jax.random.split(key, 4)

    N, C_IN, H, W = 2, 4, 16, 16
    C_OUT, K, STRIDE, PADDING = 8, 3, 1, 1

    x = jax.random.normal(k_x, (N, C_IN, H, W), dtype=jnp.float32)
    weight = 0.1 * jax.random.normal(k_w, (C_OUT, C_IN, K, K), dtype=jnp.float32)
    bias = 0.1 * jax.random.normal(k_b, (C_OUT,), dtype=jnp.float32)
    u0 = jax.random.normal(k_u, (C_OUT,), dtype=jnp.float32)
    u0 = u0 / jnp.maximum(jnp.linalg.norm(u0), 1e-12)   # spectral_norm's unit-norm u buffer

    fwd = jax.jit(functools.partial(spectral_norm_conv2d, stride=STRIDE, padding=PADDING))
    out = jax.block_until_ready(fwd(x, weight, bias, u0))

    assert out.shape == (N, C_OUT, H, W), out.shape
    assert bool(jnp.all(jnp.isfinite(out)))

    # Pure-JAX f32 reference: same single power iteration + lax conv.
    w2d = weight.reshape(C_OUT, -1)
    wtu = w2d.T @ u0
    v = wtu / jnp.maximum(jnp.linalg.norm(wtu), 1e-12)
    wv = w2d @ v
    sigma = jnp.dot(wv / jnp.maximum(jnp.linalg.norm(wv), 1e-12), wv)
    ref = jax.lax.conv_general_dilated(
        x, weight / sigma, window_strides=(STRIDE, STRIDE),
        padding=[(PADDING, PADDING), (PADDING, PADDING)],
        dimension_numbers=("NCHW", "OIHW", "NCHW")) + bias[None, :, None, None]
    err = float(jnp.max(jnp.abs(out - ref)))
    assert jnp.allclose(out, ref, atol=5e-2, rtol=5e-2), err

    print("KERNEL_OK")
</pallas_src>

<mosaic_0001>
module attributes {stable_mosaic.version = 11 : i64} {
  func.func @_sn_inv_sigma_kernel(%arg0: memref<8x36xf32, #tpu.memory_space<vmem>>, %arg1: memref<8x1xf32, #tpu.memory_space<vmem>>, %arg2: memref<1x1xf32, #tpu.memory_space<vmem>>) attributes {dimension_semantics = [], scalar_prefetch = 0 : i64, scratch_operands = 0 : i64, tpu.core_type = #tpu.core_type<tc>} {
    %c0 = arith.constant 0 : index
    %c0_0 = arith.constant 0 : index
    %0 = vector.load %arg0[%c0, %c0_0] : memref<8x36xf32, #tpu.memory_space<vmem>>, vector<8x36xf32>
    %c0_1 = arith.constant 0 : index
    %c0_2 = arith.constant 0 : index
    %1 = vector.load %arg1[%c0_1, %c0_2] : memref<8x1xf32, #tpu.memory_space<vmem>>, vector<8x1xf32>
    %2 = vector.broadcast %1 : vector<8x1xf32> to vector<8x36xf32>
    %3 = arith.mulf %0, %2 : vector<8x36xf32>
    %cst = arith.constant dense<0.000000e+00> : vector<36xf32>
    %4 = vector.multi_reduction <add>, %3, %cst [0] : vector<8x36xf32> to vector<36xf32>
    %5 = vector.shape_cast %4 : vector<36xf32> to vector<1x36xf32>
    %6 = arith.mulf %5, %5 : vector<1x36xf32>
    %cst_3 = arith.constant dense<0.000000e+00> : vector<1xf32>
    %7 = vector.multi_reduction <add>, %6, %cst_3 [1] : vector<1x36xf32> to vector<1xf32>
    %8 = vector.shape_cast %7 : vector<1xf32> to vector<1x1xf32>
    %9 = math.sqrt %8 : vector<1x1xf32>
    %cst_4 = arith.constant 9.99999996E-13 : f32
    %10 = vector.broadcast %cst_4 : f32 to vector<1x1xf32>
    %11 = arith.maximumf %9, %10 : vector<1x1xf32>
    %12 = vector.broadcast %11 : vector<1x1xf32> to vector<1x36xf32>
    %13 = arith.divf %5, %12 : vector<1x36xf32>
    %14 = vector.broadcast %13 : vector<1x36xf32> to vector<8x36xf32>
    %15 = arith.mulf %0, %14 : vector<8x36xf32>
    %cst_5 = arith.constant dense<0.000000e+00> : vector<8xf32>
    %16 = vector.multi_reduction <add>, %15, %cst_5 [1] : vector<8x36xf32> to vector<8xf32>
    %17 = vector.shape_cast %16 : vector<8xf32> to vector<8x1xf32>
    %18 = arith.mulf %17, %17 : vector<8x1xf32>
    %cst_6 = arith.constant dense<0.000000e+00> : vector<1xf32>
    %19 = vector.multi_reduction <add>, %18, %cst_6 [0] : vector<8x1xf32> to vector<1xf32>
    %20 = vector.shape_cast %19 : vector<1xf32> to vector<1x1xf32>
    %21 = math.sqrt %20 : vector<1x1xf32>
    %cst_7 = arith.constant 9.99999996E-13 : f32
    %22 = vector.broadcast %cst_7 : f32 to vector<1x1xf32>
    %23 = arith.maximumf %21, %22 : vector<1x1xf32>
    %24 = arith.divf %20, %23 : vector<1x1xf32>
    %cst_8 = arith.constant 1.000000e+00 : f32
    %25 = vector.broadcast %cst_8 : f32 to vector<1x1xf32>
    %26 = arith.divf %25, %24 : vector<1x1xf32>
    %c0_9 = arith.constant 0 : index
    %c0_10 = arith.constant 0 : index
    %27 = vector.load %arg2[%c0_9, %c0_10] : memref<1x1xf32, #tpu.memory_space<vmem>>, vector<1x1xf32>
    tpu.vector_store %arg2[%c0_9, %c0_10], %26 {strides = array<i32>} : memref<1x1xf32, #tpu.memory_space<vmem>>, vector<1x1xf32>,
    return
  }
}

module attributes {stable_mosaic.version = 11 : i64} {
  func.func @kernel(%arg0: i32, %arg1: memref<1x326x4xbf16, #tpu.memory_space<vmem>>, %arg2: memref<9x4x128xbf16, #tpu.memory_space<vmem>>, %arg3: memref<1x128xf32, #tpu.memory_space<vmem>>, %arg4: memref<1x1xf32, #tpu.memory_space<smem>>, %arg5: memref<1x288x128xf32, #tpu.memory_space<vmem>>, %arg6: memref<288x128xf32, #tpu.memory_space<vmem>>) attributes {dimension_semantics = [#tpu.dimension_semantics<parallel>], iteration_bounds = array<i64: 2>, scalar_prefetch = 0 : i64, scratch_operands = 1 : i64, tpu.core_type = #tpu.core_type<tc>, window_params = [{transform_indices = @transform_0, window_bounds = array<i64: 1, 326, 4>}, {pipeline_mode = #tpu.pipeline_mode<synchronous>, transform_indices = @transform_1, window_bounds = array<i64: 9, 4, 128>}, {pipeline_mode = #tpu.pipeline_mode<synchronous>, transform_indices = @transform_2, window_bounds = array<i64: 1, 128>}, {transform_indices = @transform_3, window_bounds = array<i64: 1, 1>}, {transform_indices = @transform_4, window_bounds = array<i64: 1, 288, 128>}]} {
    %cst = arith.constant 0.000000e+00 : f32
    %0 = vector.broadcast %cst : f32 to vector<288x128xf32>
    %c0 = arith.constant 0 : index
    %c0_0 = arith.constant 0 : index
    %1 = vector.load %arg6[%c0, %c0_0] : memref<288x128xf32, #tpu.memory_space<vmem>>, vector<288x128xf32>
    tpu.vector_store %arg6[%c0, %c0_0], %0 {strides = array<i32>} : memref<288x128xf32, #tpu.memory_space<vmem>>, vector<288x128xf32>,
    %c0_1 = arith.constant 0 : index
    %c0_2 = arith.constant 0 : index
    %c0_3 = arith.constant 0 : index
    %2 = vector.load %arg1[%c0_1, %c0_2, %c0_3] : memref<1x326x4xbf16, #tpu.memory_space<vmem>>, vector<1x288x4xbf16>
    %3 = vector.shape_cast %2 : vector<1x288x4xbf16> to vector<288x4xbf16>
    %c0_4 = arith.constant 0 : index
    %c0_5 = arith.constant 0 : index
    %4 = vector.load %arg6[%c0_4, %c0_5] : memref<288x128xf32, #tpu.memory_space<vmem>>, vector<288x128xf32>
    %c0_6 = arith.constant 0 : index
    %c0_7 = arith.constant 0 : index
    %c0_8 = arith.constant 0 : index
    %5 = vector.load %arg2[%c0_6, %c0_7, %c0_8] : memref<9x4x128xbf16, #tpu.memory_space<vmem>>, vector<1x4x128xbf16>
    %6 = vector.shape_cast %5 : vector<1x4x128xbf16> to vector<4x128xbf16>
    %cst_9 = arith.constant dense<0.000000e+00> : vector<288x128xf32>
    %7 = tpu.matmul %3, %6, %cst_9 {dimension_numbers = #tpu.dot_dimension_numbers<[1], [0], [0], [1], [0, 0, 1, 1], [], []>} : vector<288x4xbf16>, vector<4x128xbf16>, vector<288x128xf32> -> vector<288x128xf32>
    %8 = arith.addf %4, %7 : vector<288x128xf32>
    %c0_10 = arith.constant 0 : index
    %c0_11 = arith.constant 0 : index
    %9 = vector.load %arg6[%c0_10, %c0_11] : memref<288x128xf32, #tpu.memory_space<vmem>>, vector<288x128xf32>
    tpu.vector_store %arg6[%c0_10, %c0_11], %8 {strides = array<i32>} : memref<288x128xf32, #tpu.memory_space<vmem>>, vector<288x128xf32>,
    %c0_12 = arith.constant 0 : index
    %c1 = arith.constant 1 : index
    %c0_13 = arith.constant 0 : index
    %10 = vector.load %arg1[%c0_12, %c1, %c0_13] : memref<1x326x4xbf16, #tpu.memory_space<vmem>>, vector<1x288x4xbf16>
    %11 = vector.shape_cast %10 : vector<1x288x4xbf16> to vector<288x4xbf16>
    %c0_14 = arith.constant 0 : index
    %c0_15 = arith.constant 0 : index
    %12 = vector.load %arg6[%c0_14, %c0_15] : memref<288x128xf32, #tpu.memory_space<vmem>>, vector<288x128xf32>
    %c1_16 = arith.constant 1 : index
    %c0_17 = arith.constant 0 : index
    %c0_18 = arith.constant 0 : index
    %13 = vector.load %arg2[%c1_16, %c0_17, %c0_18] : memref<9x4x128xbf16, #tpu.memory_space<vmem>>, vector<1x4x128xbf16>
    %14 = vector.shape_cast %13 : vector<1x4x128xbf16> to vector<4x128xbf16>
    %cst_19 = arith.constant dense<0.000000e+00> : vector<288x128xf32>
    %15 = tpu.matmul %11, %14, %cst_19 {dimension_numbers = #tpu.dot_dimension_numbers<[1], [0], [0], [1], [0, 0, 1, 1], [], []>} : vector<288x4xbf16>, vector<4x128xbf16>, vector<288x128xf32> -> vector<288x128xf32>
    %16 = arith.addf %12, %15 : vector<288x128xf32>
    %c0_20 = arith.constant 0 : index
    %c0_21 = arith.constant 0 : index
    %17 = vector.load %arg6[%c0_20, %c0_21] : memref<288x128xf32, #tpu.memory_space<vmem>>, vector<288x128xf32>
    tpu.vector_store %arg6[%c0_20, %c0_21], %16 {strides = array<i32>} : memref<288x128xf32, #tpu.memory_space<vmem>>, vector<288x128xf32>,
    %c0_22 = arith.constant 0 : index
    %c2 = arith.constant 2 : index
    %c0_23 = arith.constant 0 : index
    %18 = vector.load %arg1[%c0_22, %c2, %c0_23] : memref<1x326x4xbf16, #tpu.memory_space<vmem>>, vector<1x288x4xbf16>
    %19 = vector.shape_cast %18 : vector<1x288x4xbf16> to vector<288x4xbf16>
    %c0_24 = arith.constant 0 : index
    %c0_25 = arith.constant 0 : index
    %20 = vector.load %arg6[%c0_24, %c0_25] : memref<288x128xf32, #tpu.memory_space<vmem>>, vector<288x128xf32>
    %c2_26 = arith.constant 2 : index
    %c0_27 = arith.constant 0 : index
    %c0_28 = arith.constant 0 : index
    %21 = vector.load %arg2[%c2_26, %c0_27, %c0_28] : memref<9x4x128xbf16, #tpu.memory_space<vmem>>, vector<1x4x128xbf16>
    %22 = vector.shape_cast %21 : vector<1x4x128xbf16> to vector<4x128xbf16>
    %cst_29 = arith.constant dense<0.000000e+00> : vector<288x128xf32>
    %23 = tpu.matmul %19, %22, %cst_29 {dimension_numbers = #tpu.dot_dimension_numbers<[1], [0], [0], [1], [0, 0, 1, 1], [], []>} : vector<288x4xbf16>, vector<4x128xbf16>, vector<288x128xf32> -> vector<288x128xf32>
    %24 = arith.addf %20, %23 : vector<288x128xf32>
    %c0_30 = arith.constant 0 : index
    %c0_31 = arith.constant 0 : index
    %25 = vector.load %arg6[%c0_30, %c0_31] : memref<288x128xf32, #tpu.memory_space<vmem>>, vector<288x128xf32>
    tpu.vector_store %arg6[%c0_30, %c0_31], %24 {strides = array<i32>} : memref<288x128xf32, #tpu.memory_space<vmem>>, vector<288x128xf32>,
    %c0_32 = arith.constant 0 : index
    %c18 = arith.constant 18 : index
    %c0_33 = arith.constant 0 : index
    %26 = vector.load %arg1[%c0_32, %c18, %c0_33] : memref<1x326x4xbf16, #tpu.memory_space<vmem>>, vector<1x288x4xbf16>
    %27 = vector.shape_cast %26 : vector<1x288x4xbf16> to vector<288x4xbf16>
    %c0_34 = arith.constant 0 : index
    %c0_35 = arith.constant 0 : index
    %28 = vector.load %arg6[%c0_34, %c0_35] : memref<288x128xf32, #tpu.memory_space<vmem>>, vector<288x128xf32>
    %c3 = arith.constant 3 : index
    %c0_36 = arith.constant 0 : index
    %c0_37 = arith.constant 0 : index
    %29 = vector.load %arg2[%c3, %c0_36, %c0_37] : memref<9x4x128xbf16, #tpu.memory_space<vmem>>, vector<1x4x128xbf16>
    %30 = vector.shape_cast %29 : vector<1x4x128xbf16> to vector<4x128xbf16>
    %cst_38 = arith.constant dense<0.000000e+00> : vector<288x128xf32>
    %31 = tpu.matmul %27, %30, %cst_38 {dimension_numbers = #tpu.dot_dimension_numbers<[1], [0], [0], [1], [0, 0, 1, 1], [], []>} : vector<288x4xbf16>, vector<4x128xbf16>, vector<288x128xf32> -> vector<288x128xf32>
    %32 = arith.addf %28, %31 : vector<288x128xf32>
    %c0_39 = arith.constant 0 : index
    %c0_40 = arith.constant 0 : index
    %33 = vector.load %arg6[%c0_39, %c0_40] : memref<288x128xf32, #tpu.memory_space<vmem>>, vector<288x128xf32>
    tpu.vector_store %arg6[%c0_39, %c0_40], %32 {strides = array<i32>} : memref<288x128xf32, #tpu.memory_space<vmem>>, vector<288x128xf32>,
    %c0_41 = arith.constant 0 : index
    %c19 = arith.constant 19 : index
    %c0_42 = arith.constant 0 : index
    %34 = vector.load %arg1[%c0_41, %c19, %c0_42] : memref<1x326x4xbf16, #tpu.memory_space<vmem>>, vector<1x288x4xbf16>
    %35 = vector.shape_cast %34 : vector<1x288x4xbf16> to vector<288x4xbf16>
    %c0_43 = arith.constant 0 : index
    %c0_44 = arith.constant 0 : index
    %36 = vector.load %arg6[%c0_43, %c0_44] : memref<288x128xf32, #tpu.memory_space<vmem>>, vector<288x128xf32>
    %c4 = arith.constant 4 : index
    %c0_45 = arith.constant 0 : index
    %c0_46 = arith.constant 0 : index
    %37 = vector.load %arg2[%c4, %c0_45, %c0_46] : memref<9x4x128xbf16, #tpu.memory_space<vmem>>, vector<1x4x128xbf16>
    %38 = vector.shape_cast %37 : vector<1x4x128xbf16> to vector<4x128xbf16>
    %cst_47 = arith.constant dense<0.000000e+00> : vector<288x128xf32>
    %39 = tpu.matmul %35, %38, %cst_47 {dimension_numbers = #tpu.dot_dimension_numbers<[1], [0], [0], [1], [0, 0, 1, 1], [], []>} : vector<288x4xbf16>, vector<4x128xbf16>, vector<288x128xf32> -> vector<288x128xf32>
    %40 = arith.addf %36, %39 : vector<288x128xf32>
    %c0_48 = arith.constant 0 : index
    %c0_49 = arith.constant 0 : index
    %41 = vector.load %arg6[%c0_48, %c0_49] : memref<288x128xf32, #tpu.memory_space<vmem>>, vector<288x128xf32>
    tpu.vector_store %arg6[%c0_48, %c0_49], %40 {strides = array<i32>} : memref<288x128xf32, #tpu.memory_space<vmem>>, vector<288x128xf32>,
    %c0_50 = arith.constant 0 : index
    %c20 = arith.constant 20 : index
    %c0_51 = arith.constant 0 : index
    %42 = vector.load %arg1[%c0_50, %c20, %c0_51] : memref<1x326x4xbf16, #tpu.memory_space<vmem>>, vector<1x288x4xbf16>
    %43 = vector.shape_cast %42 : vector<1x288x4xbf16> to vector<288x4xbf16>
    %c0_52 = arith.constant 0 : index
    %c0_53 = arith.constant 0 : index
    %44 = vector.load %arg6[%c0_52, %c0_53] : memref<288x128xf32, #tpu.memory_space<vmem>>, vector<288x128xf32>
    %c5 = arith.constant 5 : index
    %c0_54 = arith.constant 0 : index
    %c0_55 = arith.constant 0 : index
    %45 = vector.load %arg2[%c5, %c0_54, %c0_55] : memref<9x4x128xbf16, #tpu.memory_space<vmem>>, vector<1x4x128xbf16>
    %46 = vector.shape_cast %45 : vector<1x4x128xbf16> to vector<4x128xbf16>
    %cst_56 = arith.constant dense<0.000000e+00> : vector<288x128xf32>
    %47 = tpu.matmul %43, %46, %cst_56 {dimension_numbers = #tpu.dot_dimension_numbers<[1], [0], [0], [1], [0, 0, 1, 1], [], []>} : vector<288x4xbf16>, vector<4x128xbf16>, vector<288x128xf32> -> vector<288x128xf32>
    %48 = arith.addf %44, %47 : vector<288x128xf32>
    %c0_57 = arith.constant 0 : index
    %c0_58 = arith.constant 0 : index
    %49 = vector.load %arg6[%c0_57, %c0_58] : memref<288x128xf32, #tpu.memory_space<vmem>>, vector<288x128xf32>
    tpu.vector_store %arg6[%c0_57, %c0_58], %48 {strides = array<i32>} : memref<288x128xf32, #tpu.memory_space<vmem>>, vector<288x128xf32>,
    %c0_59 = arith.constant 0 : index
    %c36 = arith.constant 36 : index
    %c0_60 = arith.constant 0 : index
    %50 = vector.load %arg1[%c0_59, %c36, %c0_60] : memref<1x326x4xbf16, #tpu.memory_space<vmem>>, vector<1x288x4xbf16>
    %51 = vector.shape_cast %50 : vector<1x288x4xbf16> to vector<288x4xbf16>
    %c0_61 = arith.constant 0 : index
    %c0_62 = arith.constant 0 : index
    %52 = vector.load %arg6[%c0_61, %c0_62] : memref<288x128xf32, #tpu.memory_space<vmem>>, vector<288x128xf32>
    %c6 = arith.constant 6 : index
    %c0_63 = arith.constant 0 : index
    %c0_64 = arith.constant 0 : index
    %53 = vector.load %arg2[%c6, %c0_63, %c0_64] : memref<9x4x128xbf16, #tpu.memory_space<vmem>>, vector<1x4x128xbf16>
    %54 = vector.shape_cast %53 : vector<1x4x128xbf16> to vector<4x128xbf16>
    %cst_65 = arith.constant dense<0.000000e+00> : vector<288x128xf32>
    %55 = tpu.matmul %51, %54, %cst_65 {dimension_numbers = #tpu.dot_dimension_numbers<[1], [0], [0], [1], [0, 0, 1, 1], [], []>} : vector<288x4xbf16>, vector<4x128xbf16>, vector<288x128xf32> -> vector<288x128xf32>
    %56 = arith.addf %52, %55 : vector<288x128xf32>
    %c0_66 = arith.constant 0 : index
    %c0_67 = arith.constant 0 : index
    %57 = vector.load %arg6[%c0_66, %c0_67] : memref<288x128xf32, #tpu.memory_space<vmem>>, vector<288x128xf32>
    tpu.vector_store %arg6[%c0_66, %c0_67], %56 {strides = array<i32>} : memref<288x128xf32, #tpu.memory_space<vmem>>, vector<288x128xf32>,
    %c0_68 = arith.constant 0 : index
    %c37 = arith.constant 37 : index
    %c0_69 = arith.constant 0 : index
    %58 = vector.load %arg1[%c0_68, %c37, %c0_69] : memref<1x326x4xbf16, #tpu.memory_space<vmem>>, vector<1x288x4xbf16>
    %59 = vector.shape_cast %58 : vector<1x288x4xbf16> to vector<288x4xbf16>
    %c0_70 = arith.constant 0 : index
    %c0_71 = arith.constant 0 : index
    %60 = vector.load %arg6[%c0_70, %c0_71] : memref<288x128xf32, #tpu.memory_space<vmem>>, vector<288x128xf32>
    %c7 = arith.constant 7 : index
    %c0_72 = arith.constant 0 : index
    %c0_73 = arith.constant 0 : index
    %61 = vector.load %arg2[%c7, %c0_72, %c0_73] : memref<9x4x128xbf16, #tpu.memory_space<vmem>>, vector<1x4x128xbf16>
    %62 = vector.shape_cast %61 : vector<1x4x128xbf16> to vector<4x128xbf16>
    %cst_74 = arith.constant dense<0.000000e+00> : vector<288x128xf32>
    %63 = tpu.matmul %59, %62, %cst_74 {dimension_numbers = #tpu.dot_dimension_numbers<[1], [0], [0], [1], [0, 0, 1, 1], [], []>} : vector<288x4xbf16>, vector<4x128xbf16>, vector<288x128xf32> -> vector<288x128xf32>
    %64 = arith.addf %60, %63 : vector<288x128xf32>
    %c0_75 = arith.constant 0 : index
    %c0_76 = arith.constant 0 : index
    %65 = vector.load %arg6[%c0_75, %c0_76] : memref<288x128xf32, #tpu.memory_space<vmem>>, vector<288x128xf32>
    tpu.vector_store %arg6[%c0_75, %c0_76], %64 {strides = array<i32>} : memref<288x128xf32, #tpu.memory_space<vmem>>, vector<288x128xf32>,
    %c0_77 = arith.constant 0 : index
    %c38 = arith.constant 38 : index
    %c0_78 = arith.constant 0 : index
    %66 = vector.load %arg1[%c0_77, %c38, %c0_78] : memref<1x326x4xbf16, #tpu.memory_space<vmem>>, vector<1x288x4xbf16>
    %67 = vector.shape_cast %66 : vector<1x288x4xbf16> to vector<288x4xbf16>
    %c0_79 = arith.constant 0 : index
    %c0_80 = arith.constant 0 : index
    %68 = vector.load %arg6[%c0_79, %c0_80] : memref<288x128xf32, #tpu.memory_space<vmem>>, vector<288x128xf32>
    %c8 = arith.constant 8 : index
    %c0_81 = arith.constant 0 : index
    %c0_82 = arith.constant 0 : index
    %69 = vector.load %arg2[%c8, %c0_81, %c0_82] : memref<9x4x128xbf16, #tpu.memory_space<vmem>>, vector<1x4x128xbf16>
    %70 = vector.shape_cast %69 : vector<1x4x128xbf16> to vector<4x128xbf16>
    %cst_83 = arith.constant dense<0.000000e+00> : vector<288x128xf32>
    %71 = tpu.matmul %67, %70, %cst_83 {dimension_numbers = #tpu.dot_dimension_numbers<[1], [0], [0], [1], [0, 0, 1, 1], [], []>} : vector<288x4xbf16>, vector<4x128xbf16>, vector<288x128xf32> -> vector<288x128xf32>
    %72 = arith.addf %68, %71 : vector<288x128xf32>
    %c0_84 = arith.constant 0 : index
    %c0_85 = arith.constant 0 : index
    %73 = vector.load %arg6[%c0_84, %c0_85] : memref<288x128xf32, #tpu.memory_space<vmem>>, vector<288x128xf32>
    tpu.vector_store %arg6[%c0_84, %c0_85], %72 {strides = array<i32>} : memref<288x128xf32, #tpu.memory_space<vmem>>, vector<288x128xf32>,
    %c0_86 = arith.constant 0 : index
    %c0_87 = arith.constant 0 : index
    %74 = memref.load %arg4[%c0_86, %c0_87] : memref<1x1xf32, #tpu.memory_space<smem>>
    %c0_88 = arith.constant 0 : index
    %c0_89 = arith.constant 0 : index
    %75 = vector.load %arg6[%c0_88, %c0_89] : memref<288x128xf32, #tpu.memory_space<vmem>>, vector<288x128xf32>
    %76 = vector.broadcast %74 : f32 to vector<288x128xf32>
    %77 = arith.mulf %75, %76 : vector<288x128xf32>
    %c0_90 = arith.constant 0 : index
    %c0_91 = arith.constant 0 : index
    %78 = vector.load %arg3[%c0_90, %c0_91] : memref<1x128xf32, #tpu.memory_space<vmem>>, vector<1x128xf32>
    %79 = vector.broadcast %78 : vector<1x128xf32> to vector<288x128xf32>
    %80 = arith.addf %77, %79 : vector<288x128xf32>
    %c0_92 = arith.constant 0 : index
    %c0_93 = arith.constant 0 : index
    %c0_94 = arith.constant 0 : index
    %81 = vector.load %arg5[%c0_92, %c0_93, %c0_94] : memref<1x288x128xf32, #tpu.memory_space<vmem>>, vector<1x288x128xf32>
    %82 = vector.shape_cast %81 : vector<1x288x128xf32> to vector<288x128xf32>
    %83 = vector.shape_cast %80 : vector<288x128xf32> to vector<1x288x128xf32>
    tpu.vector_store %arg5[%c0_92, %c0_93, %c0_94], %83 {strides = array<i32>} : memref<1x288x128xf32, #tpu.memory_space<vmem>>, vector<1x288x128xf32>,
    return
  }
  func.func @transform_0(%arg0: i32) -> (i32, i32, i32) {
    %c0_i32 = arith.constant 0 : i32
    %c0_i32_0 = arith.constant 0 : i32
    %c0_i32_1 = arith.constant 0 : i32
    return %arg0, %c0_i32, %c0_i32_0 : i32, i32, i32
  }
  func.func @transform_1(%arg0: i32) -> (i32, i32, i32) {
    %c0_i32 = arith.constant 0 : i32
    %c0_i32_0 = arith.constant 0 : i32
    %c0_i32_1 = arith.constant 0 : i32
    %c0_i32_2 = arith.constant 0 : i32
    return %c0_i32, %c0_i32_0, %c0_i32_1 : i32, i32, i32
  }
  func.func @transform_2(%arg0: i32) -> (i32, i32) {
    %c0_i32 = arith.constant 0 : i32
    %c0_i32_0 = arith.constant 0 : i32
    %c0_i32_1 = arith.constant 0 : i32
    return %c0_i32, %c0_i32_0 : i32, i32
  }
  func.func @transform_3(%arg0: i32) -> (i32, i32) {
    %c0_i32 = arith.constant 0 : i32
    %c0_i32_0 = arith.constant 0 : i32
    %c0_i32_1 = arith.constant 0 : i32
    return %c0_i32, %c0_i32_0 : i32, i32
  }
  func.func @transform_4(%arg0: i32) -> (i32, i32, i32) {
    %c0_i32 = arith.constant 0 : i32
    %c0_i32_0 = arith.constant 0 : i32
    %c0_i32_1 = arith.constant 0 : i32
    return %arg0, %c0_i32, %c0_i32_0 : i32, i32, i32
  }
}

</mosaic_0001>

<bundles_post_ra>
// kernel: spectral_norm_conv2d.2
= control target key start
LH: loop header
LB: loop body
LE: loop exit
PB: predicated region body
PF: predicated region fallthrough
CT: control target
= control target key end

     0   :  { %s156_s0 = inlined_call_operand.vmem [shape: f32[8,36], index: 0, kind: input, shape index: {}]   ;;  %s157_s1 = inlined_call_operand.vmem [shape: f32[8,1], index: 1, kind: input, shape index: {}]   ;;  %s158_s2 = inlined_call_operand.hbm [shape: f32[1,1], index: 2, kind: output, shape index: {}]  }
   0x1   :  { %v13_v0 = vld [vmem:[%s157_s1] sm:$0xff] }
   0x2   :  { %7 = vsyncpa [#allocation3], 0  ;;  %v118_v1 = vmov 0   ;;  %v12_v2 = vld [vmem:[%s156_s0] sm:$0xff]  ;;  %vm20_vm0 = vcmask 293888   ;;  %s119_s0 = smov [#allocation2]  }
   0x3   :  { %83 = vset.pattern.permute.xlu0 %v118_v1  ;;  %s73_s1 = sshll.u32 %s119_s0, 4  ;;  %vm65_vm5 = vcmask 0   ;;  %s74_s1 = int_to_ptr.vmem [resolvable:$true] %s73_s1 }
   0x4   :  { %16 = vperm.xlu0 %83, %v13_v0   ;;  %s94_s13 = scalar_lea.vmem %s74_s1, 16  ;;  %s98_s14 = scalar_lea.vmem %s74_s1, 32 }
   0x5   :  { %p95_p0 = scmp.ne.s32.totalorder %s74_s1, %s94_s13  ;;  %p99_p1 = scmp.lt.s32.totalorder %s74_s1, %s74_s1 }
   0x6   :  { %p100_p2 = scmp.lt.s32.totalorder %s98_s14, %s94_s13 }
   0x8   :  { %p101_p3 = por %p100_p2, %p99_p1 }
   0xa   :  { %p102_p4 = pnand %p101_p3, %p95_p0 }
  0x83   :  { %v17_v3 = vpop.permute.xlu0 %16 }
  0x84   :  { %v19_v4 = vmul.f32 %v17_v3, %v12_v2 }
  0x86   :  { %v21_v5 = vsel %vm20_vm0, %v19_v4, 0.0 }
  0x87   :  { %v22_v6 = vrot.slane %v21_v5, 4 }
  0x89   :  { %v23_v7 = vadd.f32 %v22_v6, %v21_v5 }
  0x8b   :  { %v24_v8 = vrot.slane %v23_v7, 2 }
  0x8d   :  { %v25_v9 = vadd.f32 %v24_v8, %v23_v7 }
  0x8f   :  { %v26_v10 = vrot.slane %v25_v9, 1 }
  0x91   :  { %v27_v11 = vadd.f32 %v26_v10, %v25_v9 }
  0x93   :  { %v28_v12 = vmul.f32 %v27_v11, %v27_v11 }
  0x95   :  { %v29_v13 = vsel %vm20_vm0, %v28_v12, 0.0 }
  0x96   :  { %30 = vadd.xlane.f32.xlu0 %v29_v13 }
 0x123   :  { %v31_v14 = vpop.xlane.xlu0 %30 }
 0x124   :  { %84 = vrsqrt.f32 %v31_v14  ;;  %vm34_vm1 = vcmp.eq.f32.partialorder %v31_v14, inf  ;;  %v37_v17 = vand.u32 2147483648, %v31_v14  ;;  %vm36_vm2 = vcmp.eq.f32.partialorder %v31_v14, 0.0 }
 0x12e   :  { %v85_v15 = vpop.eup %84 }
 0x12f   :  { %v33_v16 = vmul.f32 %v85_v15, %v31_v14 }
 0x131   :  { %v35_v18 = vsel %vm34_vm1, %v31_v14, %v33_v16 }
 0x132   :  { %v38_v19 = vsel %vm36_vm2, %v37_v17, %v35_v18 }
 0x133   :  { %v39_v20 = vmax.f32 %v38_v19, 1e-12 }
 0x135   :  { %86 = vrcp.f32 %v39_v20 }
 0x13f   :  { %v87_v21 = vpop.eup %86 }
 0x140   :  { %v41_v22 = vmul.f32 %v87_v21, %v27_v11 }
 0x142   :  { %v42_v23 = vmul.f32 %v41_v22, %v12_v2 }
 0x144   :  { %v43_v24 = vsel %vm20_vm0, %v42_v23, 0.0 }
 0x145   :  { %44 = vadd.xlane.f32.xlu1 %v43_v24 }
 0x1d2   :  { %v45_v25 = vpop.xlane.xlu1 %44 }
 0x1d3   :  { %v46_v26 = vmul.f32 %v45_v25, %v45_v25 }
 0x1d5   :  { %v47_v27 = vrot.slane %v46_v26, 4 }
 0x1d7   :  { %v48_v28 = vadd.f32 %v47_v27, %v46_v26 }
 0x1d9   :  { %v49_v29 = vrot.slane %v48_v28, 2 }
 0x1db   :  { %v50_v30 = vadd.f32 %v49_v29, %v48_v28 }
 0x1dd   :  { %v51_v31 = vrot.slane %v50_v30, 1 }
 0x1df   :  { %v52_v32 = vadd.f32 %v51_v31, %v50_v30 }
 0x1e1   :  { %88 = vrsqrt.f32 %v52_v32  ;;  %vm55_vm3 = vcmp.eq.f32.partialorder %v52_v32, inf  ;;  %v58_v35 = vand.u32 2147483648, %v52_v32  ;;  %vm57_vm4 = vcmp.eq.f32.partialorder %v52_v32, 0.0 }
 0x1eb   :  { %v89_v33 = vpop.eup %88 }
 0x1ec   :  { %v54_v34 = vmul.f32 %v89_v33, %v52_v32 }
 0x1ee   :  { %v56_v36 = vsel %vm55_vm3, %v52_v32, %v54_v34 }
 0x1ef   :  { %v59_v37 = vsel %vm57_vm4, %v58_v35, %v56_v36 }
 0x1f0   :  { %v60_v38 = vmax.f32 %v59_v37, 1e-12 }
 0x1f2   :  { %90 = vrcp.f32 %v60_v38 }
 0x1fc   :  { %v91_v39 = vpop.eup %90 }
 0x1fd   :  { %v62_v40 = vmul.f32 %v91_v39, %v52_v32 }
 0x1ff   :  { %92 = vrcp.f32 %v62_v40 }
 0x209   :  { %v93_v41 = vpop.eup %92 }
 0x20a   :  { %66 = vst.msk [vmem:[#allocation2] sm:$0x1] %vm65_vm5, %v93_v41 }
 0x20b   :  { %105 = shalt.err (!%p102_p4)
}
 0x20c   :  { %s106_s17 = scalar_lea.hbm %s158_s2, 16 }
 0x20d   :  { %p107_p5 = scmp.ne.s32.totalorder %s158_s2, %s106_s17  ;;  %p110_p6 = scmp.lt.u32.totalorder %s106_s17, %s158_s2 }
 0x20f   :  { %p112_p7 = pnand %p110_p6, %p107_p5 }
 0x211   :  { %115 = shalt.err (!%p112_p7)
}
 0x212   :  { %76 = dma.vmem_to_hbm [thread:$0]  %s74_s1, 16, %s158_s2, [#allocation3]  }
 0x213   :  { %116 = dma.done.wait [#allocation3], 16  }
 0x214   :  { %117 = vsyncadd [#allocation3], 4294967280 }
 0x215   :  { %80 = vsyncpa [#allocation3], 1 }

// kernel: spectral_norm_conv2d.3
= control target key start
LH: loop header
LB: loop body
LE: loop exit
PB: predicated region body
PF: predicated region fallthrough
CT: control target
= control target key end

     0   :  { %s6766_s17 = smov 0   ;;  %s7486_s0 = inlined_call_operand.vmem [shape: bf16[2,326,4], index: 0, kind: input, shape index: {}]   ;;  %s7487_s1 = inlined_call_operand.vmem [shape: bf16[9,4,128], index: 1, kind: input, shape index: {}]   ;;  %s7488_s2 = inlined_call_operand.vmem [shape: f32[1,128], index: 2, kind: input, shape index: {}]   ;;  %s7489_s3 = inlined_call_operand.<no memory space> [shape: f32[1,1], index: 3, kind: input, shape index: {}]   ;;  %s7490_s4 = inlined_call_operand.vmem [shape: f32[2,288,128], index: 4, kind: output, shape index: {}]  }
   0x1   :  { %9 = sst [smem:[#allocation3]] %s7489_s3 }
   0x2 LB: > { %s5386_s18 = sadd.s32 4294967295, %s6736_s17   ;;  %p5390_p0 = scmp.ge.s32.totalorder %s6736_s17, 1  ;;  %s6736_s17 = sphi %s6766_s17, %s15_s17  }
   0x3   : > { %p163_p1 = scmp.lt.s32.totalorder %s6736_s17, 3 }
   0x5   : > { %p164_p2 = pnand %p5390_p0, %p163_p1 }
   0x6   : > { %v308_v0 = vld [vmem:[%s7487_s1] sm:$0x3] (!%p164_p2)  ;;  %vm454_vm0 = vcmask (!%p164_p2), 1041408   ;;  %p189_p3 = scmp.lt.s32.totalorder (!%p164_p2), %s5386_s18, 1  ;;  %v5543_v2 = vld [vmem:[%s7487_s1 + $0x8] sm:$0x3] (!%p164_p2) }
   0x7   : > { %167 = sbr.rel (%p164_p2) target bundleno = 570 (0x23a), region = 36  ;;  %6539 = vmatprep.subr.msk.bf16.mxu1 (!%p164_p2), %vm454_vm0, %v308_v0  ;;  %v456_v1 = vsel (!%p164_p2), %vm454_vm0, %v308_v0, 0  ;;  %6543 = vmatprep.subr.msk.bf16.mxu0 (!%p164_p2), %vm454_vm0, %v5543_v2  ;;  %v6786_v3 = vsel (!%p164_p2), %vm454_vm0, %v5543_v2, 0  ;;  %v5581_v4 = vld [vmem:[%s7487_s1 + $0xa] sm:$0x3] (!%p164_p2)  ;;  %vm399_vm1 = vcmask (!%p164_p2), 31744  }
   0x8   : > { %5908 = vmatpush3.bf16.msra.mxu1 (!%p164_p2), %v456_v1  ;;  %v5429_v5 = vld [vmem:[%s7487_s1 + $0x2] sm:$0x3] (!%p164_p2)  ;;  %6060 = vmatpush3.bf16.msra.mxu0 (!%p164_p2), %v6786_v3  ;;  %vm2521_vm2 = vsmask.f32 (!%p164_p2), 6400  ;;  %v6807_v7 = vld [vmem:[%s7487_s1 + $0x4] sm:$0x3] (!%p164_p2) }
   0x9   : > { %6540 = vmatprep.subr.msk.bf16.mxu1 (!%p164_p2), %vm454_vm0, %v5429_v5  ;;  %6545 = vmatprep.subr.msk.bf16.mxu0 (!%p164_p2), %vm454_vm0, %v5581_v4  ;;  %v1079_v9 = vsel (!%p164_p2), %vm454_vm0, %v5429_v5, 0  ;;  %v3259_v18 = vsel (!%p164_p2), %vm454_vm0, %v5581_v4, 0  ;;  %v6832_v40 = vld [vmem:[%s7487_s1 + $0xc] sm:$0x3] (!%p164_p2)  ;;  %vm3166_vm3 = vcmask (!%p164_p2), 1045504   ;;  %vm1498_vm5 = vcmask (!%p164_p2), 1046528  }
   0xa   : > { %vm875_vm4 = vsmask.f32 (!%p164_p2), 7424  ;;  %vm4189_vm6 = vsmask.f32 (!%p164_p2), 5376  ;;  %vm4834_vm7 = vcmask (!%p164_p2), 1044480   ;;  %s5178_s16 = sld [smem:[#allocation3]] (!%p164_p2) }
   0xe   : > { %s7492_s18 = smov (!%p189_p3, %s5386_s18), 1 }
   0xf   : > { %s6549_s26 = smul.u32 164, %s7492_s18 }
  0x10   : > { %s6550_s19 = smul.u32 288, %s7492_s18 }
  0x11   : > { %s6801_s29 = scalar_lea.vmem %s7486_s0, %s6549_s26 }
  0x12   : > { %v6559_v6 = vld [vmem:[%s6801_s29] sm:$0xff]   ;;  %v6560_v8 = vld [vmem:[%s6801_s29 + $0x8] sm:$0xff]   ;;  %v6562_v11 = vld [vmem:[%s6801_s29 + $0x10] sm:$0xff]   ;;  %s7365_s18 = scalar_lea.vmem %s7490_s4, %s6550_s19 }
  0x13   : > { %5909 = vmatprep.mubr.msk.bf16.mxu1 %vm399_vm1, %v6559_v6  ;;  %v6561_v10 = vld [vmem:[%s6801_s29 + $0x8] sm:$0xfe]   ;;  %v6563_v12 = vld [vmem:[%s6801_s29 + $0x10] sm:$0xff]   ;;  %v2531_v15 = vshrl.u32 %v6562_v11, 16  ;;  %v2534_v16 = vshll.u32 %v6562_v11, 16  ;;  %v6564_v17 = vld [vmem:[%s6801_s29 + $0x18] sm:$0xff]  }
  0x14   : > { %5910 = vmatmul.mubr.msk.bf16.vlgmr.msra.gmra.mrb[0].mxu1 %vm399_vm1, %v6560_v8  ;;  %v2523_v13 = vshrl.u32 %v6561_v10, 16  ;;  %v2526_v14 = vshll.u32 %v6561_v10, 16  ;;  %v2540_v23 = vshrl.u32 %v6564_v17, 16  ;;  %v2543_v24 = vshll.u32 %v6564_v17, 16  ;;  %v6565_v25 = vld [vmem:[%s6801_s29 + $0x18] sm:$0xff]   ;;  %v6566_v26 = vld [vmem:[%s6801_s29 + $0x20] sm:$0xff]  }
  0x15   : > { %5946 = vmatpush3.bf16.msra.mxu1 %v1079_v9  ;;  %5913 = vmatprep.mubr.msk.bf16.mxu1 %vm399_vm1, %v6563_v12  ;;  %v2533_v21 = vrot.slane %v2531_v15, 1  ;;  %v2536_v22 = vrot.slane %v2534_v16, 2  ;;  %v2549_v31 = vshrl.u32 %v6566_v26, 16  ;;  %v2552_v32 = vshll.u32 %v6566_v26, 16  ;;  %v6567_v33 = vld [vmem:[%s6801_s29 + $0x20] sm:$0xff]   ;;  %v6568_v34 = vld [vmem:[%s6801_s29 + $0x28] sm:$0xff]  }
  0x16   : > { %6541 = vmatprep.subr.msk.bf16.mxu1 %vm454_vm0, %v6807_v7  ;;  %v2525_v19 = vrot.slane %v2523_v13, 1  ;;  %v2528_v20 = vrot.slane %v2526_v14, 2  ;;  %v2542_v29 = vrot.slane %v2540_v23, 1  ;;  %v2545_v30 = vrot.slane %v2543_v24, 2  ;;  %v6569_v42 = vld [vmem:[%s6801_s29 + $0x28] sm:$0xff]   ;;  %v6570_v43 = vld [vmem:[%s6801_s29 + $0x30] sm:$0xff]  }
  0x17   : > { %v2537_v28 = vor.u32 %v2536_v22, %v2533_v21  ;;  %v2551_v37 = vrot.slane %v2549_v31, 1  ;;  %v2554_v38 = vrot.slane %v2552_v32, 2  ;;  %v2558_v39 = vshrl.u32 %v6568_v34, 16  ;;  %v6571_v47 = vld [vmem:[%s6801_s29 + $0x30] sm:$0xff]   ;;  %v6572_v51 = vld [vmem:[%s6801_s29 + $0x38] sm:$0xff]   ;;  %v6574_v58 = vld [vmem:[%s6801_s29 + $0x40] sm:$0xff]  }
  0x18   : > { %v2529_v27 = vor.u32 %v2528_v20, %v2525_v19  ;;  %v2546_v36 = vor.u32 %v2545_v30, %v2542_v29  ;;  %v2561_v41 = vshll.u32 %v6568_v34, 16  ;;  %v2567_v49 = vshrl.u32 %v6570_v43, 16  ;;  %v6576_v1 = vld [vmem:[%s6801_s29 + $0x48] sm:$0xff]   ;;  %v6573_v4 = vld [vmem:[%s6801_s29 + $0x38] sm:$0xff]   ;;  %v6578_v8 = vld [vmem:[%s6801_s29 + $0x50] sm:$0xff]  }
  0x19   : > { %v2555_v45 = vor.u32 %v2554_v38, %v2551_v37  ;;  %v2560_v46 = vrot.slane %v2558_v39, 1  ;;  %v2570_v50 = vshll.u32 %v6570_v43, 16  ;;  %v2576_v56 = vshrl.u32 %v6572_v51, 16  ;;  %v6575_v12 = vld [vmem:[%s6801_s29 + $0x40] sm:$0xff]   ;;  %v6577_v23 = vld [vmem:[%s6801_s29 + $0x48] sm:$0xff]   ;;  %v6579_v24 = vld [vmem:[%s6801_s29 + $0x50] sm:$0xff]  }
  0x1a   : > { %v2538_v35 = vsel %vm2521_vm2, %v2529_v27, %v2537_v28  ;;  %v2547_v44 = vsel %vm2521_vm2, %v2537_v28, %v2546_v36  ;;  %v2563_v48 = vrot.slane %v2561_v41, 2  ;;  %v2569_v54 = vrot.slane %v2567_v49, 1  ;;  %v6583_v29 = vld [vmem:[%s6801_s29 + $0x10] sm:$0xff]   ;;  %v6582_v34 = vld [vmem:[%s6801_s29 + $0x8] sm:$0xfc]   ;;  %v6584_v37 = vld [vmem:[%s6801_s29 + $0x60] sm:$0xff]  }
  0x1b   : > { %6061 = vmatprep.mubr.msk.bf16.mxu0 %vm399_vm1, %v2538_v35  ;;  %v2556_v52 = vsel %vm2521_vm2, %v2546_v36, %v2555_v45  ;;  %v2572_v55 = vrot.slane %v2570_v50, 2  ;;  %v2579_v57 = vshll.u32 %v6572_v51, 16  ;;  %v2578_v60 = vrot.slane %v2576_v56, 1  ;;  %v6581_v35 = vld [vmem:[%s6801_s29 + $0x58] sm:$0xff]   ;;  %v6596_v49 = vld [vmem:[%s6801_s29] sm:$0xff]   ;;  %v6589_v50 = vld [vmem:[%s6801_s29 + $0x28] sm:$0xff]  }
  0x1c   : > { %5914 = vmatmul.mubr.msk.bf16.gmra.mrb[4].mxu1 %vm399_vm1, %v6565_v25  ;;  %6062 = vmatmul.mubr.msk.bf16.vlgmr.msra.gmra.mrb[0].mxu0 %vm399_vm1, %v2547_v44  ;;  %v2564_v53 = vor.u32 %v2563_v48, %v2560_v46  ;;  %v2585_v63 = vshrl.u32 %v6574_v58, 16  ;;  %v2588_v0 = vshll.u32 %v6574_v58, 16  ;;  %v2594_v9 = vshrl.u32 %v6576_v1, 16  ;;  %v6587_v44 = vld [vmem:[%s6801_s29 + $0x20] sm:$0xff]  }
  0x1d   : > { %5917 = vmatprep.mubr.msk.bf16.mxu1 %vm399_vm1, %v6567_v33  ;;  %6098 = vmatpush3.bf16.msra.mxu0 %v3259_v18  ;;  %v2573_v59 = vor.u32 %v2572_v55, %v2569_v54  ;;  %v2581_v62 = vrot.slane %v2579_v57, 2  ;;  %v2597_v10 = vshll.u32 %v6576_v1, 16  ;;  %v2603_v14 = vshrl.u32 %v6578_v8, 16  ;;  %v6580_v18 = vld [vmem:[%s6801_s29 + $0x58] sm:$0xff]   ;;  %v6591_v55 = vld [vmem:[%s6801_s29 + $0x30] sm:$0xff]  }
  0x1e   : > { %6065 = vmatprep.mubr.msk.bf16.mxu0 %vm399_vm1, %v2556_v52  ;;  %6546 = vmatprep.subr.msk.bf16.mxu0 %vm454_vm0, %v6832_v40  ;;  %v2565_v61 = vsel %vm2521_vm2, %v2555_v45, %v2564_v53  ;;  %v2587_v5 = vrot.slane %v2585_v63, 1  ;;  %v2590_v6 = vrot.slane %v2588_v0, 2  ;;  %v2606_v15 = vshll.u32 %v6578_v8, 16  ;;  %v6586_v45 = vld [vmem:[%s6801_s29 + $0x68] sm:$0xff]   ;;  %v6593_v0 = vld [vmem:[%s6801_s29 + $0x38] sm:$0xff]   ;;  %v6599_v1 = vld [vmem:[%s6801_s29 + $0x10] sm:$0xff]  }
  0x1f   : > { %v2574_v2 = vsel %vm2521_vm2, %v2564_v53, %v2573_v59  ;;  %v2582_v11 = vor.u32 %v2581_v62, %v2578_v60  ;;  %v2596_v16 = vrot.slane %v2594_v9, 1  ;;  %v2599_v17 = vrot.slane %v2597_v10, 2  ;;  %v6597_v53 = vld [vmem:[%s6801_s29 + $0x8] sm:$0xff]  }
  0x20   : > { %v2591_v13 = vor.u32 %v2590_v6, %v2587_v5  ;;  %v2605_v21 = vrot.slane %v2603_v14, 1  ;;  %v2608_v22 = vrot.slane %v2606_v15, 2  ;;  %v2612_v26 = vshrl.u32 %v6580_v18, 16  ;;  %v6900_v57 = vld [vmem:[%s7487_s1 + $0xe] sm:$0x3]  ;;  %v6601_v6 = vld [vmem:[%s6801_s29 + $0x18] sm:$0xff]  }
  0x21   : > { %v2583_v19 = vsel %vm2521_vm2, %v2573_v59, %v2582_v11  ;;  %v2600_v25 = vor.u32 %v2599_v17, %v2596_v16  ;;  %v2615_v27 = vshll.u32 %v6580_v18, 16  ;;  %v3167_v38 = vrot.slane %v6582_v34, 2  ;;  %v6590_v59 = vld [vmem:[%s6801_s29 + $0x78] sm:$0xff]   ;;  %v6594_v10 = vld [vmem:[%s6801_s29 + $0x88] sm:$0xff]  }
  0x22   : > { %v2592_v20 = vsel %vm2521_vm2, %v2582_v11, %v2591_v13  ;;  %v2609_v28 = vor.u32 %v2608_v22, %v2605_v21  ;;  %v2614_v31 = vrot.slane %v2612_v26, 1  ;;  %v3168_v39 = vrot.slane %v6583_v29, 2  ;;  %v6598_v18 = vld [vmem:[%s6801_s29 + $0x48] sm:$0xff]  }
  0x23   : > { %v2601_v30 = vsel %vm2521_vm2, %v2591_v13, %v2600_v25  ;;  %v2617_v32 = vrot.slane %v2615_v27, 2  ;;  %v3172_v48 = vrot.slane %v6587_v44, 2  ;;  %v3770_v52 = vsel %vm454_vm0, %v6832_v40, 0  ;;  %v6592_v40 = vld [vmem:[%s6801_s29 + $0x80] sm:$0xff]   ;;  %v6605_v27 = vld [vmem:[%s6801_s29 + $0x28] sm:$0xff]   ;;  %v6609_v44 = vld [vmem:[%s6801_s29 + $0x38] sm:$0xff]  }
  0x24   : > { %5918 = vmatmul.mubr.msk.bf16.gmra.mrb[8].mxu1 %vm399_vm1, %v6569_v42  ;;  %6066 = vmatmul.mubr.msk.bf16.gmra.mrb[4].mxu0 %vm399_vm1, %v2565_v61  ;;  %v2610_v33 = vsel %vm2521_vm2, %v2600_v25, %v2609_v28  ;;  %v6585_v42 = vld [vmem:[%s6801_s29 + $0x18] sm:$0xff]   ;;  %v3169_v43 = vsel %vm3166_vm3, %v3167_v38, %v3168_v39  ;;  %v879_v56 = vshll.u32 %v6596_v49, 16  ;;  %v3174_v58 = vrot.slane %v6589_v50, 2 }
  0x25   : > { %5921 = vmatprep.mubr.msk.bf16.mxu1 %vm399_vm1, %v6571_v47  ;;  %6069 = vmatprep.mubr.msk.bf16.mxu0 %vm399_vm1, %v2574_v2  ;;  %v6873_v36 = vor.u32 %v2617_v32, %v2614_v31  ;;  %v3170_v46 = vrot.slane %v6585_v42, 2  ;;  %v6588_v47 = vld [vmem:[%s6801_s29 + $0x70] sm:$0xff]   ;;  %v884_v60 = vshll.u32 %v6597_v53, 16  ;;  %v3176_v61 = vrot.slane %v6591_v55, 2  ;;  %v6602_v38 = vld [vmem:[%s6801_s29 + $0x58] sm:$0xff]  }
  0x26   : > { %v877_v62 = vshrl.u32 %v6596_v49, 16  ;;  %v881_v63 = vrot.slane %v879_v56, 1  ;;  %v3175_v2 = vsel %vm3166_vm3, %v3172_v48, %v3174_v58  ;;  %v892_v11 = vshll.u32 %v6599_v1, 16  ;;  %v6606_v56 = vld [vmem:[%s6801_s29 + $0x68] sm:$0xff]  }
  0x27   : > { %v2619_v41 = vsel %vm2521_vm2, %v2609_v28, %v6873_v36  ;;  %v3171_v51 = vsel %vm3166_vm3, %v3168_v39, %v3170_v46  ;;  %v3173_v54 = vsel %vm3166_vm3, %v3170_v46, %v3172_v48  ;;  %v886_v5 = vrot.slane %v884_v60, 1 }
  0x28   : > { %v3177_v8 = vsel %vm3166_vm3, %v3174_v58, %v3176_v61  ;;  %v882_v9 = vor.u32 %v881_v63, %v877_v62  ;;  %v888_v13 = vshrl.u32 %v6597_v53, 16  ;;  %v896_v16 = vshrl.u32 %v6599_v1, 16  ;;  %v6613_v1 = vld [vmem:[%s6801_s29 + $0x48] sm:$0xff]  }
  0x29   : > { %v900_v17 = vshll.u32 %v6601_v6, 16  ;;  %v1591_v28 = vsel %vm454_vm0, %v6807_v7, 0  ;;  %v3182_v29 = vrot.slane %v6598_v18, 2  ;;  %v6604_v7 = vld [vmem:[%s6801_s29 + $0x60] sm:$0xff]   ;;  %v3186_v48 = vrot.slane %v6602_v38, 2 }
  0x2a   : > { %v887_v15 = vsel %vm875_vm4, %v882_v9, %v886_v5  ;;  %v890_v22 = vor.u32 %v888_v13, %v886_v5  ;;  %v3188_v49 = vrot.slane %v6604_v7, 2 }
  0x2b   : > { %v902_v26 = vrot.slane %v900_v17, 1  ;;  %v6612_v17 = vld [vmem:[%s6801_s29 + $0x80] sm:$0xff]  }
  0x2c   : > { %5922 = vmatmul.mubr.msk.bf16.gmra.mrb[12].mxu1 %vm399_vm1, %v6573_v4  ;;  %6070 = vmatmul.mubr.msk.bf16.gmra.mrb[8].mxu0 %vm399_vm1, %v2583_v19  ;;  %v6595_v4 = vld [vmem:[%s6801_s29 + $0x40] sm:$0xff]   ;;  %v894_v19 = vrot.slane %v892_v11, 1  ;;  %v3189_v62 = vsel %vm3166_vm3, %v3186_v48, %v3188_v49  ;;  %v948_v11 = vshll.u32 %v6613_v1, 16 }
  0x2d   : > { %5925 = vmatprep.mubr.msk.bf16.mxu1 %vm399_vm1, %v6575_v12  ;;  %6073 = vmatprep.mubr.msk.bf16.mxu0 %vm399_vm1, %v2592_v20  ;;  %v3178_v12 = vrot.slane %v6593_v0, 2  ;;  %v3180_v14 = vrot.slane %v6595_v4, 2  ;;  %v6603_v20 = vld [vmem:[%s6801_s29 + $0x20] sm:$0xff]  }
  0x2e   : > { %v898_v25 = vor.u32 %v896_v16, %v894_v19  ;;  %v895_v31 = vsel %vm875_vm4, %v890_v22, %v894_v19  ;;  %v6969_v22 = vld [vmem:[%s7487_s1 + $0x6] sm:$0x3] }
  0x2f   : > { %v3179_v21 = vsel %vm3166_vm3, %v3176_v61, %v3178_v12  ;;  %v3183_v42 = vsel %vm3166_vm3, %v3180_v14, %v3182_v29  ;;  %v6608_v61 = vld [vmem:[%s6801_s29 + $0x70] sm:$0xff]  }
  0x30   : > { %v903_v34 = vsel %vm875_vm4, %v898_v25, %v902_v26 }
  0x34   : > { %5926 = vmatmul.mubr.msk.bf16.gmra.mrb[16].mxu1 %vm399_vm1, %v6577_v23  ;;  %6074 = vmatmul.mubr.msk.bf16.gmra.mrb[12].mxu0 %vm399_vm1, %v2601_v30  ;;  %v6600_v23 = vld [vmem:[%s6801_s29 + $0x50] sm:$0xff]   ;;  %v908_v30 = vshll.u32 %v6603_v20, 16 }
  0x35   : > { %5929 = vmatprep.mubr.msk.bf16.mxu1 %vm399_vm1, %v6579_v24  ;;  %6077 = vmatprep.mubr.msk.bf16.mxu0 %vm399_vm1, %v2610_v33  ;;  %v3181_v24 = vsel %vm3166_vm3, %v3178_v12, %v3180_v14  ;;  %v3184_v32 = vrot.slane %v6600_v23, 2  ;;  %v904_v33 = vshrl.u32 %v6601_v6, 16  ;;  %v3192_v6 = vrot.slane %v6608_v61, 2  ;;  %v6610_v12 = vld [vmem:[%s6801_s29 + $0x78] sm:$0xff]   ;;  %v6615_v14 = vld [vmem:[%s6801_s29 + $0x50] sm:$0xff]  }
  0x36   : > { %v910_v39 = vrot.slane %v908_v30, 1  ;;  %v956_v23 = vshll.u32 %v6615_v14, 16 }
  0x3c   : > { %5930 = vmatmul.mubr.msk.bf16.gmra.mrb[20].mxu1 %vm399_vm1, %v6581_v35  ;;  %6078 = vmatmul.mubr.msk.bf16.gmra.mrb[16].mxu0 %vm399_vm1, %v2619_v41  ;;  %v912_v35 = vshrl.u32 %v6603_v20, 16  ;;  %v6607_v41 = vld [vmem:[%s6801_s29 + $0x30] sm:$0xff]   ;;  %v950_v20 = vrot.slane %v948_v11, 1  ;;  %v6623_v11 = vld [vmem:[%s6801_s29 + $0x20] sm:$0xff]  }
  0x3d   : > { %5933 = vmatprep.mubr.msk.bf16.mxu1 %vm399_vm1, %v6584_v37  ;;  %6099 = vmatprep.mubr.msk.bf16.mxu0 %vm399_vm1, %v3169_v43  ;;  %v916_v37 = vshll.u32 %v6605_v27, 16  ;;  %v906_v43 = vor.u32 %v904_v33, %v902_v26  ;;  %v924_v50 = vshll.u32 %v6607_v41, 16  ;;  %v928_v53 = vshrl.u32 %v6607_v41, 16  ;;  %v6619_v33 = vld [vmem:[%s6801_s29 + $0x60] sm:$0xff]   ;;  %v6622_v41 = vld [vmem:[%s6801_s29 + $0x68] sm:$0xff]  }
  0x3e   : > { %v914_v46 = vor.u32 %v912_v35, %v910_v39  ;;  %v3196_v26 = vrot.slane %v6612_v17, 2  ;;  %v6630_v17 = vld [vmem:[%s6801_s29 + $0x88] sm:$0xff]  }
  0x3f   : > { %v926_v58 = vrot.slane %v924_v50, 1  ;;  %v980_v50 = vshll.u32 %v6622_v41, 16 }
  0x41   : > { %v930_v63 = vor.u32 %v928_v53, %v926_v58 }
  0x44   : > { %5934 = vmatmul.mubr.msk.bf16.gmra.mrb[24].mxu1 %vm399_vm1, %v6586_v45  ;;  %6100 = vmatmul.mubr.msk.bf16.vlgmr.msra.gmra.mrb[0].mxu0 %vm399_vm1, %v3171_v51  ;;  %v3185_v45 = vsel %vm3166_vm3, %v3182_v29, %v3184_v32  ;;  %v911_v51 = vsel %vm875_vm4, %v906_v43, %v910_v39  ;;  %v960_v29 = vshrl.u32 %v6615_v14, 16  ;;  %v972_v43 = vshll.u32 %v6619_v33, 16 }
  0x45   : > { %5937 = vmatprep.mubr.msk.bf16.mxu1 %vm399_vm1, %v6588_v47  ;;  %6136 = vmatpush3.bf16.msra.mxu0 %v3770_v52  ;;  %v918_v47 = vrot.slane %v916_v37, 1  ;;  %v920_v52 = vshrl.u32 %v6605_v27, 16  ;;  %v952_v27 = vshrl.u32 %v6613_v1, 16  ;;  %v6616_v37 = vld [vmem:[%s6801_s29 + $0x90] sm:$0xff]   ;;  %v984_v1 = vshrl.u32 %v6622_v41, 16 }
  0x46   : > { %6103 = vmatprep.mubr.msk.bf16.mxu0 %vm399_vm1, %v3173_v54  ;;  %6547 = vmatprep.subr.msk.bf16.mxu0 %vm454_vm0, %v6900_v57  ;;  %v932_v54 = vshll.u32 %v6609_v44, 16 }
  0x47   : > { %v919_v55 = vsel %vm875_vm4, %v914_v46, %v918_v47  ;;  %v922_v60 = vor.u32 %v920_v52, %v918_v47  ;;  %v954_v35 = vor.u32 %v952_v27, %v950_v20  ;;  %v6624_v52 = vld [vmem:[%s6801_s29 + $0x70] sm:$0xff]  }
  0x48   : > { %v934_v0 = vrot.slane %v932_v54, 1  ;;  %v6627_v27 = vld [vmem:[%s6801_s29 + $0x30] sm:$0xff]  }
  0x49   : > { %v927_v5 = vsel %vm875_vm4, %v922_v60, %v926_v58  ;;  %v6620_v58 = vld [vmem:[%s6801_s29 + $0x10] sm:$0xfc]   ;;  %v6626_v60 = vld [vmem:[%s6801_s29 + $0x78] sm:$0xff]  }
  0x4a   : > { %v935_v9 = vsel %vm875_vm4, %v930_v63, %v934_v0 }
  0x4c   : > { %5938 = vmatmul.mubr.msk.bf16.gmra.mrb[28].mxu1 %vm399_vm1, %v6590_v59  ;;  %6104 = vmatmul.mubr.msk.bf16.gmra.mrb[4].mxu0 %vm399_vm1, %v3175_v2  ;;  %v6611_v59 = vld [vmem:[%s6801_s29 + $0x40] sm:$0xff]   ;;  %v3190_v2 = vrot.slane %v6606_v56, 2 }
  0x4d   : > { %5941 = vmatprep.mubr.msk.bf16.mxu1 %vm399_vm1, %v6592_v40  ;;  %6107 = vmatprep.mubr.msk.bf16.mxu0 %vm399_vm1, %v3177_v8  ;;  %v3187_v40 = vsel %vm3166_vm3, %v3184_v32, %v3186_v48  ;;  %v940_v4 = vshll.u32 %v6611_v59, 16  ;;  %v936_v8 = vshrl.u32 %v6609_v44, 16  ;;  %v958_v32 = vrot.slane %v956_v23, 1  ;;  %v6618_v48 = vld [vmem:[%s6801_s29 + $0x98] ss:$0 sps:$4 sm:$0x33]  }
  0x4e   : > { %v3193_v18 = vsel %vm3166_vm3, %v3190_v2, %v3192_v6  ;;  %v3202_v61 = vrot.slane %v6618_v48, 2  ;;  %v1000_v23 = vshrl.u32 %v6626_v60, 16 }
  0x4f   : > { %v942_v13 = vrot.slane %v940_v4, 1  ;;  %v938_v16 = vor.u32 %v936_v8, %v934_v0  ;;  %v962_v39 = vor.u32 %v960_v29, %v958_v32  ;;  %v959_v44 = vsel %vm875_vm4, %v954_v35, %v958_v32  ;;  %v6628_v8 = vld [vmem:[%s6801_s29 + $0x80] sm:$0xff]   ;;  %v6632_v29 = vld [vmem:[%s6801_s29 + $0x90] ss:$0 sps:$4 sm:$0x11]   ;;  %v6629_v32 = vld [vmem:[%s6801_s29 + $0x38] sm:$0xff]  }
  0x50   : > { %v3687_v41 = vrot.slane %v6629_v32, 2  ;;  %v6649_v32 = vld [vmem:[%s6801_s29 + $0x40] sm:$0xff]  }
  0x51   : > { %v943_v25 = vsel %vm875_vm4, %v938_v16, %v942_v13 }
  0x54   : > { %5942 = vmatmul.mubr.msk.bf16.gmra.mrb[32].mxu1 %vm399_vm1, %v6594_v10  ;;  %6108 = vmatmul.mubr.msk.bf16.gmra.mrb[8].mxu0 %vm399_vm1, %v3179_v21  ;;  %v944_v10 = vshrl.u32 %v6611_v59, 16  ;;  %v6617_v21 = vld [vmem:[%s6801_s29 + $0x58] sm:$0xff]  }
  0x55   : > { %5947 = vmatprep.mubr.msk.bf16.mxu1 %vm399_vm1, %v887_v15  ;;  %6111 = vmatprep.mubr.msk.bf16.mxu0 %vm399_vm1, %v3181_v24  ;;  %v3191_v15 = vsel %vm3166_vm3, %v3188_v49, %v3190_v2  ;;  %v3194_v24 = vrot.slane %v6610_v12, 2  ;;  %v964_v30 = vshll.u32 %v6617_v21, 16  ;;  %v968_v46 = vshrl.u32 %v6617_v21, 16 }
  0x56   : > { %v946_v19 = vor.u32 %v944_v10, %v942_v13  ;;  %v976_v49 = vshrl.u32 %v6619_v33, 16  ;;  %v3678_v2 = vrot.slane %v6620_v58, 2  ;;  %v6625_v13 = vld [vmem:[%s6801_s29 + $0x28] sm:$0xff]   ;;  %v4415_v33 = vsel %vm454_vm0, %v6900_v57, 0 }
  0x57   : > { %v3197_v38 = vsel %vm3166_vm3, %v3194_v24, %v3196_v26  ;;  %v966_v7 = vrot.slane %v964_v30, 1  ;;  %v3683_v21 = vrot.slane %v6625_v13, 2 }
  0x59   : > { %v967_v47 = vsel %vm875_vm4, %v962_v39, %v966_v7  ;;  %v970_v54 = vor.u32 %v968_v46, %v966_v7  ;;  %v1020_v39 = vshll.u32 %v6632_v29, 16  ;;  %v3685_v7 = vrot.slane %v6627_v27, 2  ;;  %v6631_v46 = vld [vmem:[%s6801_s29 + $0x40] sm:$0xff]  }
  0x5b   : > { %v3686_v48 = vsel %vm3166_vm3, %v3683_v21, %v3685_v7 }
  0x5c   : > { %5948 = vmatmul.mubr.msk.bf16.vlgmr.msra.gmra.mrb[0].mxu1 %vm399_vm1, %v895_v31  ;;  %6112 = vmatmul.mubr.msk.bf16.gmra.mrb[12].mxu0 %vm399_vm1, %v3183_v42  ;;  %v6614_v31 = vld [vmem:[%s6801_s29 + $0x88] sm:$0xff]  }
  0x5d   : > { %5951 = vmatprep.mubr.msk.bf16.mxu1 %vm399_vm1, %v903_v34  ;;  %5984 = vmatpush3.bf16.msra.mxu1 %v1591_v28  ;;  %v951_v28 = vsel %vm875_vm4, %v946_v19, %v950_v20  ;;  %v3195_v34 = vsel %vm3166_vm3, %v3192_v6, %v3194_v24  ;;  %v3198_v42 = vrot.slane %v6614_v31, 2  ;;  %v996_v6 = vshll.u32 %v6626_v60, 16  ;;  %v6636_v60 = vld [vmem:[%s6801_s29 + $0x50] sm:$0xff]  }
  0x5e   : > { %6115 = vmatprep.mubr.msk.bf16.mxu0 %vm399_vm1, %v3185_v45  ;;  %6542 = vmatprep.subr.msk.bf16.mxu1 %vm454_vm0, %v6969_v22  ;;  %v3200_v45 = vrot.slane %v6616_v37, 2  ;;  %v3681_v19 = vrot.slane %v6623_v11, 2 }
  0x5f   : > { %v3199_v53 = vsel %vm3166_vm3, %v3196_v26, %v3198_v42  ;;  %v998_v16 = vrot.slane %v996_v6, 1  ;;  %v1012_v26 = vshll.u32 %v6630_v17, 16  ;;  %v6641_v6 = vld [vmem:[%s6801_s29 + $0x20] sm:$0xff]  }
  0x60   : > { %v3201_v56 = vsel %vm3166_vm3, %v3198_v42, %v3200_v45  ;;  %v3203_v10 = vsel %vm3166_vm3, %v3200_v45, %v3202_v61  ;;  %v1016_v42 = vshrl.u32 %v6630_v17, 16  ;;  %v6634_v45 = vld [vmem:[%s6801_s29] sm:$0xfe]   ;;  %v1506_v13 = vrot.slane %v6641_v6, 1 }
  0x61   : > { %v1002_v31 = vor.u32 %v1000_v23, %v998_v16  ;;  %v1014_v37 = vrot.slane %v1012_v26, 1  ;;  %v6647_v23 = vld [vmem:[%s6801_s29 + $0x38] sm:$0xff]   ;;  %v6661_v6 = vld [vmem:[%s6801_s29 + $0x20] sm:$0xff]  }
  0x62   : > { %v1512_v29 = vrot.slane %v6647_v23, 1 }
  0x64   : > { %5952 = vmatmul.mubr.msk.bf16.gmra.mrb[4].mxu1 %vm399_vm1, %v911_v51  ;;  %6116 = vmatmul.mubr.msk.bf16.gmra.mrb[16].mxu0 %vm399_vm1, %v3187_v40  ;;  %v974_v51 = vrot.slane %v972_v43, 1  ;;  %v982_v40 = vrot.slane %v980_v50, 1  ;;  %v6635_v43 = vld [vmem:[%s6801_s29 + $0x8] sm:$0xff]   ;;  %v3688_v50 = vsel %vm3166_vm3, %v3685_v7, %v3687_v41  ;;  %v1514_v7 = vrot.slane %v6649_v32, 1 }
  0x65   : > { %5955 = vmatprep.mubr.msk.bf16.mxu1 %vm399_vm1, %v919_v55  ;;  %6119 = vmatprep.mubr.msk.bf16.mxu0 %vm399_vm1, %v3189_v62  ;;  %v6621_v55 = vld [vmem:[%s6801_s29 + $0x18] sm:$0xff]   ;;  %v988_v62 = vshll.u32 %v6624_v52, 16 }
  0x66   : > { %v978_v59 = vor.u32 %v976_v49, %v974_v51  ;;  %v975_v63 = vsel %vm875_vm4, %v970_v54, %v974_v51  ;;  %v3679_v0 = vrot.slane %v6621_v55, 2  ;;  %v986_v12 = vor.u32 %v984_v1, %v982_v40  ;;  %v6633_v51 = vld [vmem:[%s6801_s29 + $0x48] sm:$0xff]  }
  0x67   : > { %v1018_v49 = vor.u32 %v1016_v42, %v1014_v37  ;;  %v3689_v54 = vrot.slane %v6631_v46, 2  ;;  %v3691_v58 = vrot.slane %v6633_v51, 2 }
  0x68   : > { %v983_v4 = vsel %vm875_vm4, %v978_v59, %v982_v40  ;;  %v3680_v14 = vsel %vm3166_vm3, %v3678_v2, %v3679_v0  ;;  %v3682_v30 = vsel %vm3166_vm3, %v3679_v0, %v3681_v19  ;;  %v6639_v40 = vld [vmem:[%s6801_s29 + $0x18] sm:$0xff]   ;;  %v3693_v2 = vrot.slane %v6636_v60, 2 }
  0x69   : > { %v3690_v61 = vsel %vm3166_vm3, %v3687_v41, %v3689_v54  ;;  %v3692_v0 = vsel %vm3166_vm3, %v3689_v54, %v3691_v58  ;;  %v1504_v1 = vrot.slane %v6639_v40, 1  ;;  %v6650_v41 = vld [vmem:[%s6801_s29 + $0x88] sm:$0xff]   ;;  %v6654_v54 = vld [vmem:[%s6801_s29 + $0x98] sm:$0xff]  }
  0x6a   : > { %v3694_v11 = vsel %vm3166_vm3, %v3691_v58, %v3693_v2  ;;  %v3707_v46 = vrot.slane %v6650_v41, 2  ;;  %v6657_v58 = vld [vmem:[%s6801_s29 + $0x60] sm:$0xff]   ;;  %v6660_v40 = vld [vmem:[%s6801_s29 + $0x68] sm:$0xff]  }
  0x6c   : > { %5956 = vmatmul.mubr.msk.bf16.gmra.mrb[8].mxu1 %vm399_vm1, %v927_v5  ;;  %6120 = vmatmul.mubr.msk.bf16.gmra.mrb[20].mxu0 %vm399_vm1, %v3191_v15  ;;  %v992_v5 = vshrl.u32 %v6624_v52, 16  ;;  %v1499_v52 = vrot.slane %v6634_v45, 1  ;;  %v6653_v45 = vld [vmem:[%s6801_s29 + $0x50] sm:$0xff]  }
  0x6d   : > { %5959 = vmatprep.mubr.msk.bf16.mxu1 %vm399_vm1, %v935_v9  ;;  %6123 = vmatprep.mubr.msk.bf16.mxu0 %vm399_vm1, %v3193_v18  ;;  %v990_v9 = vrot.slane %v988_v62, 1  ;;  %v1004_v18 = vshll.u32 %v6628_v8, 16  ;;  %v1518_v51 = vrot.slane %v6653_v45, 1 }
  0x6f   : > { %v994_v15 = vor.u32 %v992_v5, %v990_v9  ;;  %v991_v20 = vsel %vm875_vm4, %v986_v12, %v990_v9  ;;  %v6643_v9 = vld [vmem:[%s6801_s29 + $0x28] sm:$0xff]   ;;  %v6640_v12 = vld [vmem:[%s6801_s29 + $0x60] sm:$0xff]  }
  0x70   : > { %v3697_v17 = vrot.slane %v6640_v12, 2  ;;  %v6663_v12 = vld [vmem:[%s6801_s29 + $0x28] sm:$0xff]  }
  0x71   : > { %v999_v24 = vsel %vm875_vm4, %v994_v15, %v998_v16  ;;  %v6642_v15 = vld [vmem:[%s6801_s29 + $0x68] sm:$0xff]   ;;  %v1508_v16 = vrot.slane %v6643_v9, 1 }
  0x74   : > { %5960 = vmatmul.mubr.msk.bf16.gmra.mrb[12].mxu1 %vm399_vm1, %v943_v25  ;;  %6124 = vmatmul.mubr.msk.bf16.gmra.mrb[24].mxu0 %vm399_vm1, %v3195_v34  ;;  %v1008_v25 = vshrl.u32 %v6628_v8, 16  ;;  %v3684_v34 = vsel %vm3166_vm3, %v3681_v19, %v3683_v21  ;;  %v6645_v19 = vld [vmem:[%s6801_s29 + $0x30] sm:$0xff]   ;;  %v1509_v21 = vsel %vm1498_vm5, %v1506_v13, %v1508_v16 }
  0x75   : > { %5963 = vmatprep.mubr.msk.bf16.mxu1 %vm399_vm1, %v951_v28  ;;  %6127 = vmatprep.mubr.msk.bf16.mxu0 %vm399_vm1, %v3197_v38  ;;  %v1006_v28 = vrot.slane %v1004_v18, 1  ;;  %v7026_v38 = vld [vmem:[%s7487_s1 + $0x10] sm:$0x3]  ;;  %v1507_v18 = vsel %vm1498_vm5, %v1504_v1, %v1506_v13  ;;  %v1510_v26 = vrot.slane %v6645_v19, 1  ;;  %v4211_v19 = vshll.u32 %v6661_v6, 16 }
  0x77   : > { %v1010_v35 = vor.u32 %v1008_v25, %v1006_v28  ;;  %v1007_v57 = vsel %vm875_vm4, %v1002_v31, %v1006_v28  ;;  %v6644_v25 = vld [vmem:[%s6801_s29 + $0x70] sm:$0xff]   ;;  %v6646_v28 = vld [vmem:[%s6801_s29 + $0x78] sm:$0xff]   ;;  %v1511_v31 = vsel %vm1498_vm5, %v1508_v16, %v1510_v26 }
  0x7c   : > { %5964 = vmatmul.mubr.msk.bf16.gmra.mrb[16].mxu1 %vm399_vm1, %v959_v44  ;;  %6128 = vmatmul.mubr.msk.bf16.gmra.mrb[28].mxu0 %vm399_vm1, %v3199_v53  ;;  %v1015_v44 = vsel %vm875_vm4, %v1010_v35, %v1014_v37  ;;  %v1500_v53 = vrot.slane %v6635_v43, 1  ;;  %v6651_v35 = vld [vmem:[%s6801_s29 + $0x48] sm:$0xff]  }
  0x7d   : > { %5967 = vmatprep.mubr.msk.bf16.mxu1 %vm399_vm1, %v967_v47  ;;  %6131 = vmatprep.mubr.msk.bf16.mxu0 %vm399_vm1, %v3201_v56  ;;  %v1022_v47 = vrot.slane %v1020_v39, 1  ;;  %v6637_v56 = vld [vmem:[%s6801_s29 + $0x10] sm:$0xff]   ;;  %v6648_v39 = vld [vmem:[%s6801_s29 + $0x80] sm:$0xff]   ;;  %v1516_v42 = vrot.slane %v6651_v35, 1 }
  0x7e   : > { %v1501_v59 = vsel %vm1498_vm5, %v1499_v52, %v1500_v53  ;;  %v1502_v62 = vrot.slane %v6637_v56, 1  ;;  %v3705_v43 = vrot.slane %v6648_v39, 2  ;;  %v6659_v52 = vld [vmem:[%s6801_s29 + $0x18] sm:$0xff]   ;;  %v6658_v56 = vld [vmem:[%s6801_s29 + $0x10] sm:$0xfc]   ;;  %v6666_v39 = vld [vmem:[%s6801_s29 + $0x80] sm:$0xff]  }
  0x7f   : > { %v1023_v55 = vsel %vm875_vm4, %v1018_v49, %v1022_v47  ;;  %v1517_v47 = vsel %vm1498_vm5, %v1514_v7, %v1516_v42  ;;  %v6652_v49 = vld [vmem:[%s6801_s29 + $0x90] sm:$0xff]   ;;  %v1519_v60 = vsel %vm1498_vm5, %v1516_v42, %v1518_v51 }
  0x80   : > { %v1505_v8 = vsel %vm1498_vm5, %v1502_v62, %v1504_v1 }
  0x84   : > { %5968 = vmatmul.mubr.msk.bf16.gmra.mrb[20].mxu1 %vm399_vm1, %v975_v63  ;;  %6132 = vmatmul.mubr.msk.bf16.gmra.mrb[32].mxu0 %vm399_vm1, %v3203_v10  ;;  %v6638_v63 = vld [vmem:[%s6801_s29 + $0x58] sm:$0xff]   ;;  %v2102_v10 = vsel %vm454_vm0, %v6969_v22, 0  ;;  %v6729_v22 = vld [vmem:[%s7487_s1 + $0x8] sm:$0x3] }
  0x85   : > { %5971 = vmatprep.mubr.msk.bf16.mxu1 %vm399_vm1, %v983_v4  ;;  %6137 = vmatprep.mubr.msk.bf16.mxu0 %vm399_vm1, %v3680_v14  ;;  %v1503_v4 = vsel %vm1498_vm5, %v1500_v53, %v1502_v62  ;;  %v3695_v5 = vrot.slane %v6638_v63, 2  ;;  %v3708_v53 = vsel %vm3166_vm3, %v3705_v43, %v3707_v46  ;;  %v4199_v62 = vshrl.u32 %v6659_v52, 16 }
  0x86   : > { %v4202_v63 = vshll.u32 %v6659_v52, 16 }
  0x87   : > { %v3696_v14 = vsel %vm3166_vm3, %v3693_v2, %v3695_v5  ;;  %v4191_v2 = vshrl.u32 %v6658_v56, 16  ;;  %v4201_v9 = vrot.slane %v4199_v62, 2 }
  0x8c   : > { %5972 = vmatmul.mubr.msk.bf16.gmra.mrb[24].mxu1 %vm399_vm1, %v991_v20  ;;  %6138 = vmatmul.mubr.msk.bf16.vlgmr.msra.gmra.mrb[0].mxu0 %vm399_vm1, %v3682_v30  ;;  %v3699_v20 = vrot.slane %v6642_v15, 2  ;;  %v3701_v30 = vrot.slane %v6644_v25, 2  ;;  %v4220_v25 = vshll.u32 %v6663_v12, 16 }
  0x8d   : > { %5975 = vmatprep.mubr.msk.bf16.mxu1 %vm399_vm1, %v999_v24  ;;  %6174 = vmatpush3.bf16.msra.mxu0 %v4415_v33  ;;  %v3698_v24 = vsel %vm3166_vm3, %v3695_v5, %v3697_v17  ;;  %v3703_v33 = vrot.slane %v6646_v28, 2  ;;  %v1522_v5 = vrot.slane %v6657_v58, 1  ;;  %v6665_v28 = vld [vmem:[%s6801_s29 + $0x30] sm:$0xff]  }
  0x8e   : > { %6141 = vmatprep.mubr.msk.bf16.mxu0 %vm399_vm1, %v3684_v34  ;;  %6548 = vmatprep.subr.msk.bf16.mxu0 %vm454_vm0, %v7026_v38  ;;  %v3700_v27 = vsel %vm3166_vm3, %v3697_v17, %v3699_v20  ;;  %v1513_v34 = vsel %vm1498_vm5, %v1510_v26, %v1512_v29  ;;  %v3702_v37 = vsel %vm3166_vm3, %v3699_v20, %v3701_v30  ;;  %v6662_v17 = vld [vmem:[%s6801_s29 + $0x70] sm:$0xff]   ;;  %v4217_v20 = vshrl.u32 %v6663_v12, 16  ;;  %v6664_v26 = vld [vmem:[%s6801_s29 + $0x78] sm:$0xff]  }
  0x8f   : > { %v4222_v35 = vrot.slane %v4220_v25, 3  ;;  %v6674_v12 = vld [vmem:[%s6801_s29 + $0x50] sm:$0xff]  }
  0x90   : > { %v4219_v32 = vrot.slane %v4217_v20, 2  ;;  %v4265_v20 = vshll.u32 %v6674_v12, 16 }
  0x92   : > { %v4223_v45 = vor.u32 %v4222_v35, %v4219_v32  ;;  %v6678_v32 = vld [vmem:[%s6801_s29 + $0x60] sm:$0xff]  }
  0x94   : > { %5976 = vmatmul.mubr.msk.bf16.gmra.mrb[28].mxu1 %vm399_vm1, %v1007_v57  ;;  %6142 = vmatmul.mubr.msk.bf16.gmra.mrb[4].mxu0 %vm399_vm1, %v3686_v48  ;;  %v3704_v57 = vsel %vm3166_vm3, %v3701_v30, %v3703_v33  ;;  %v6655_v48 = vld [vmem:[%s6801_s29 + $0x58] sm:$0xff]  }
  0x95   : > { %5979 = vmatprep.mubr.msk.bf16.mxu1 %vm399_vm1, %v1015_v44  ;;  %6145 = vmatprep.mubr.msk.bf16.mxu0 %vm399_vm1, %v3688_v50  ;;  %v1515_v44 = vsel %vm1498_vm5, %v1512_v29, %v1514_v7  ;;  %v3706_v50 = vsel %vm3166_vm3, %v3703_v33, %v3705_v43  ;;  %v6667_v33 = vld [vmem:[%s6801_s29 + $0x38] sm:$0xff]   ;;  %v4226_v7 = vshrl.u32 %v6665_v28, 16 }
  0x96   : > { %v4235_v43 = vshrl.u32 %v6667_v33, 16 }
  0x9c   : > { %5980 = vmatmul.mubr.msk.bf16.gmra.mrb[32].mxu1 %vm399_vm1, %v1023_v55  ;;  %6146 = vmatmul.mubr.msk.bf16.gmra.mrb[8].mxu0 %vm399_vm1, %v3690_v61  ;;  %v1520_v55 = vrot.slane %v6655_v48, 1  ;;  %v6656_v61 = vld [vmem:[%s6801_s29 + $0xa0] ss:$0 sps:$4 sm:$0x33]   ;;  %v4228_v48 = vrot.slane %v4226_v7, 2 }
  0x9d   : > { %5985 = vmatprep.mubr.msk.bf16.mxu1 %vm399_vm1, %v1501_v59  ;;  %6149 = vmatprep.mubr.msk.bf16.mxu0 %vm399_vm1, %v3692_v0  ;;  %v3709_v59 = vrot.slane %v6652_v49, 2  ;;  %v3711_v0 = vrot.slane %v6654_v54, 2  ;;  %v3713_v16 = vrot.slane %v6656_v61, 2 }
  0x9e   : > { %v1521_v1 = vsel %vm1498_vm5, %v1518_v51, %v1520_v55  ;;  %v6669_v51 = vld [vmem:[%s6801_s29 + $0x40] sm:$0xff]  }
  0x9f   : > { %v3712_v13 = vsel %vm3166_vm3, %v3709_v59, %v3711_v0  ;;  %v3714_v29 = vsel %vm3166_vm3, %v3711_v0, %v3713_v16  ;;  %v4244_v62 = vshrl.u32 %v6669_v51, 16  ;;  %v6670_v0 = vld [vmem:[%s6801_s29 + $0x90] ss:$0 sps:$4 sm:$0x11]  }
  0xa4   : > { %5986 = vmatmul.mubr.msk.bf16.vlgmr.msra.gmra.mrb[0].mxu1 %vm399_vm1, %v1503_v4  ;;  %6150 = vmatmul.mubr.msk.bf16.gmra.mrb[12].mxu0 %vm399_vm1, %v3694_v11  ;;  %v4194_v4 = vshll.u32 %v6658_v56, 16  ;;  %v1524_v11 = vrot.slane %v6660_v40, 1 }
  0xa5   : > { %5989 = vmatprep.mubr.msk.bf16.mxu1 %vm399_vm1, %v1505_v8  ;;  %6022 = vmatpush3.bf16.msra.mxu1 %v2102_v10  ;;  %v3710_v8 = vsel %vm3166_vm3, %v3707_v46, %v3709_v59  ;;  %v4204_v10 = vrot.slane %v4202_v63, 3  ;;  %v6671_v59 = vld [vmem:[%s6801_s29 + $0x48] sm:$0xff]   ;;  %v4247_v63 = vshll.u32 %v6669_v51, 16 }
  0xa6   : > { %6544 = vmatprep.subr.msk.bf16.mxu1 %vm454_vm0, %v6729_v22  ;;  %6153 = vmatprep.mubr.msk.bf16.mxu0 %vm399_vm1, %v3696_v14  ;;  %v4193_v14 = vrot.slane %v4191_v2, 2  ;;  %v4196_v15 = vrot.slane %v4194_v4, 3  ;;  %v4208_v22 = vshrl.u32 %v6661_v6, 16  ;;  %v4256_v2 = vshll.u32 %v6671_v59, 16  ;;  %v6672_v4 = vld [vmem:[%s6801_s29 + $0x8] sm:$0xfe]  }
  0xa7   : > { %v4205_v23 = vor.u32 %v4204_v10, %v4201_v9  ;;  %v4246_v9 = vrot.slane %v4244_v62, 2  ;;  %v4249_v10 = vrot.slane %v4247_v63, 3  ;;  %v6683_v63 = vld [vmem:[%s6801_s29 + $0x38] sm:$0xff]  }
  0xa8   : > { %v4210_v30 = vrot.slane %v4208_v22, 2  ;;  %v6676_v22 = vld [vmem:[%s6801_s29 + $0x58] sm:$0xff]  }
  0xa9   : > { %v4271_v25 = vshrl.u32 %v6676_v22, 16 }
  0xac   : > { %5990 = vmatmul.mubr.msk.bf16.gmra.mrb[4].mxu1 %vm399_vm1, %v1507_v18  ;;  %6154 = vmatmul.mubr.msk.bf16.gmra.mrb[16].mxu0 %vm399_vm1, %v3698_v24  ;;  %v1523_v18 = vsel %vm1498_vm5, %v1520_v55, %v1522_v5  ;;  %v1525_v24 = vsel %vm1498_vm5, %v1522_v5, %v1524_v11  ;;  %v4927_v55 = vsel %vm454_vm0, %v7026_v38, 0  ;;  %v6673_v5 = vld [vmem:[%s6801_s29 + $0x10] sm:$0xff]  }
  0xad   : > { %5993 = vmatprep.mubr.msk.bf16.mxu1 %vm399_vm1, %v1509_v21  ;;  %6157 = vmatprep.mubr.msk.bf16.mxu0 %vm399_vm1, %v3700_v27  ;;  %v4197_v21 = vor.u32 %v4196_v15, %v4193_v14  ;;  %v1526_v27 = vrot.slane %v6662_v17, 1  ;;  %v4258_v14 = vrot.slane %v4256_v2, 3  ;;  %v2010_v15 = vrot.slane %v6672_v4, 1  ;;  %v6685_v2 = vld [vmem:[%s6801_s29 + $0x40] sm:$0xff]  }
  0xae   : > { %v2011_v16 = vrot.slane %v6673_v5, 1  ;;  %v4250_v17 = vor.u32 %v4249_v10, %v4246_v9  ;;  %v6686_v9 = vld [vmem:[%s6801_s29 + $0x80] sm:$0xff]  }
  0xaf   : > { %v1527_v42 = vsel %vm1498_vm5, %v1524_v11, %v1526_v27  ;;  %v1534_v11 = vrot.slane %v6670_v0, 1 }
  0xb4   : > { %5994 = vmatmul.mubr.msk.bf16.gmra.mrb[8].mxu1 %vm399_vm1, %v1511_v31  ;;  %6158 = vmatmul.mubr.msk.bf16.gmra.mrb[20].mxu0 %vm399_vm1, %v3702_v37  ;;  %v4213_v31 = vrot.slane %v4211_v19, 3  ;;  %v1528_v37 = vrot.slane %v6664_v26, 1  ;;  %v4262_v19 = vshrl.u32 %v6674_v12, 16  ;;  %v4274_v26 = vshll.u32 %v6676_v22, 16 }
  0xb5   : > { %5997 = vmatprep.mubr.msk.bf16.mxu1 %vm399_vm1, %v1513_v34  ;;  %6161 = vmatprep.mubr.msk.bf16.mxu0 %vm399_vm1, %v3704_v57  ;;  %v4206_v34 = vsel %vm4189_vm6, %v4197_v21, %v4205_v23  ;;  %v4229_v57 = vshll.u32 %v6665_v28, 16  ;;  %v6675_v21 = vld [vmem:[%s6801_s29 + $0x18] sm:$0xff]   ;;  %v4316_v22 = vshrl.u32 %v6686_v9, 16 }
  0xb6   : > { %v4214_v41 = vor.u32 %v4213_v31, %v4210_v30  ;;  %v1529_v46 = vsel %vm1498_vm5, %v1526_v27, %v1528_v37  ;;  %v6677_v27 = vld [vmem:[%s6801_s29 + $0x20] sm:$0xff]   ;;  %v4267_v30 = vrot.slane %v4265_v20, 3  ;;  %v2013_v31 = vrot.slane %v6675_v21, 1 }
  0xb7   : > { %v4231_v49 = vrot.slane %v4229_v57, 3  ;;  %v4276_v35 = vrot.slane %v4274_v26, 3  ;;  %v4318_v26 = vrot.slane %v4316_v22, 2 }
  0xb8   : > { %v4215_v52 = vsel %vm4189_vm6, %v4205_v23, %v4214_v41  ;;  %v4224_v56 = vsel %vm4189_vm6, %v4214_v41, %v4223_v45  ;;  %v2014_v57 = vsel %vm1498_vm5, %v2011_v16, %v2013_v31  ;;  %v4280_v41 = vshrl.u32 %v6678_v32, 16 }
  0xb9   : > { %v4232_v40 = vor.u32 %v4231_v49, %v4228_v48  ;;  %v6681_v48 = vld [vmem:[%s6801_s29 + $0x30] sm:$0xff]  }
  0xbb   : > { %v4233_v6 = vsel %vm4189_vm6, %v4223_v45, %v4232_v40 }
  0xbc   : > { %5998 = vmatmul.mubr.msk.bf16.gmra.mrb[12].mxu1 %vm399_vm1, %v1515_v44  ;;  %6162 = vmatmul.mubr.msk.bf16.gmra.mrb[24].mxu0 %vm399_vm1, %v3706_v50  ;;  %v4238_v44 = vshll.u32 %v6667_v33, 16  ;;  %v1530_v50 = vrot.slane %v6666_v39, 1  ;;  %v6680_v39 = vld [vmem:[%s6801_s29 + $0x68] sm:$0xff]  }
  0xbd   : > { %6001 = vmatprep.mubr.msk.bf16.mxu1 %vm399_vm1, %v1517_v47  ;;  %6165 = vmatprep.mubr.msk.bf16.mxu0 %vm399_vm1, %v3708_v53  ;;  %v6668_v47 = vld [vmem:[%s6801_s29 + $0x88] sm:$0xff]   ;;  %v4237_v53 = vrot.slane %v4235_v43, 2 }
  0xbe   : > { %v4240_v54 = vrot.slane %v4238_v44, 3  ;;  %v1532_v58 = vrot.slane %v6668_v47, 1  ;;  %v6679_v43 = vld [vmem:[%s6801_s29 + $0x28] sm:$0xff]   ;;  %v4292_v47 = vshll.u32 %v6680_v39, 16 }
  0xc0   : > { %v4241_v61 = vor.u32 %v4240_v54, %v4237_v53  ;;  %v1533_v38 = vsel %vm1498_vm5, %v1530_v50, %v1532_v58  ;;  %v6682_v53 = vld [vmem:[%s6801_s29 + $0x70] sm:$0xff]  }
  0xc1   : > { %v4301_v62 = vshll.u32 %v6682_v53, 16 }
  0xc2   : > { %v4251_v28 = vsel %vm4189_vm6, %v4241_v61, %v4250_v17 }
  0xc4   : > { %6002 = vmatmul.mubr.msk.bf16.gmra.mrb[16].mxu1 %vm399_vm1, %v1519_v60  ;;  %6166 = vmatmul.mubr.msk.bf16.gmra.mrb[28].mxu0 %vm399_vm1, %v3710_v8  ;;  %v1531_v60 = vsel %vm1498_vm5, %v1528_v37, %v1530_v50  ;;  %v4242_v8 = vsel %vm4189_vm6, %v4232_v40, %v4241_v61  ;;  %v2015_v37 = vrot.slane %v6677_v27, 1  ;;  %v4282_v50 = vrot.slane %v4280_v41, 2 }
  0xc5   : > { %6005 = vmatprep.mubr.msk.bf16.mxu1 %vm399_vm1, %v1521_v1  ;;  %6169 = vmatprep.mubr.msk.bf16.mxu0 %vm399_vm1, %v3712_v13  ;;  %v4253_v1 = vshrl.u32 %v6671_v59, 16  ;;  %v6684_v59 = vld [vmem:[%s6801_s29 + $0x78] sm:$0xff]   ;;  %v4298_v61 = vshrl.u32 %v6682_v53, 16 }
  0xc6   : > { %v2016_v45 = vsel %vm1498_vm5, %v2013_v31, %v2015_v37 }
  0xc7   : > { %v4255_v13 = vrot.slane %v4253_v1, 2  ;;  %v4310_v1 = vshll.u32 %v6684_v59, 16  ;;  %v4300_v5 = vrot.slane %v4298_v61, 2 }
  0xc9   : > { %v4259_v23 = vor.u32 %v4258_v14, %v4255_v13  ;;  %v4312_v12 = vrot.slane %v4310_v1, 3  ;;  %v2023_v13 = vrot.slane %v6685_v2, 1  ;;  %v6688_v14 = vld [vmem:[%s6801_s29 + $0x88] sm:$0xff]   ;;  %v6696_v2 = vld [vmem:[%s6801_s29 + $0x10] sm:$0xf8]  }
  0xca   : > { %v4325_v21 = vshrl.u32 %v6688_v14, 16 }
  0xcb   : > { %v4260_v33 = vsel %vm4189_vm6, %v4250_v17, %v4259_v23  ;;  %v4319_v17 = vshll.u32 %v6686_v9, 16  ;;  %v6700_v9 = vld [vmem:[%s6801_s29 + $0x78] sm:$0xff]  }
  0xcc   : > { %6006 = vmatmul.mubr.msk.bf16.gmra.mrb[20].mxu1 %vm399_vm1, %v1523_v18  ;;  %6170 = vmatmul.mubr.msk.bf16.gmra.mrb[32].mxu0 %vm399_vm1, %v3714_v29  ;;  %v1535_v18 = vsel %vm1498_vm5, %v1532_v58, %v1534_v11  ;;  %v4264_v29 = vrot.slane %v4262_v19, 2  ;;  %v2019_v58 = vrot.slane %v6681_v48, 1  ;;  %v4327_v31 = vrot.slane %v4325_v21, 2  ;;  %v6704_v21 = vld [vmem:[%s6801_s29 + $0x88] sm:$0xff]  }
  0xcd   : > { %6009 = vmatprep.mubr.msk.bf16.mxu1 %vm399_vm1, %v1525_v24  ;;  %6175 = vmatprep.mubr.msk.bf16.mxu0 %vm399_vm1, %v4206_v34  ;;  %v2012_v24 = vsel %vm1498_vm5, %v2010_v15, %v2011_v16  ;;  %v4273_v34 = vrot.slane %v4271_v25, 2  ;;  %v4321_v27 = vrot.slane %v4319_v17, 3  ;;  %v6701_v17 = vld [vmem:[%s6801_s29 + $0x28] sm:$0xff]  }
  0xce   : > { %v4268_v7 = vor.u32 %v4267_v30, %v4264_v29  ;;  %v6690_v29 = vld [vmem:[%s6801_s29 + $0x90] sm:$0xff]  }
  0xcf   : > { %v4277_v44 = vor.u32 %v4276_v35, %v4273_v34  ;;  %v6692_v34 = vld [vmem:[%s6801_s29 + $0x98] sm:$0xff]   ;;  %v4322_v35 = vor.u32 %v4321_v27, %v4318_v26  ;;  %v6710_v26 = vld [vmem:[%s6801_s29 + $0x60] sm:$0xff]  }
  0xd0   : > { %v4269_v49 = vsel %vm4189_vm6, %v4259_v23, %v4268_v7  ;;  %v4328_v23 = vshll.u32 %v6688_v14, 16 }
  0xd1   : > { %v4278_v54 = vsel %vm4189_vm6, %v4268_v7, %v4277_v44  ;;  %v4337_v7 = vshll.u32 %v6690_v29, 16 }
  0xd3   : > { %v4339_v48 = vrot.slane %v4337_v7, 3  ;;  %v6712_v7 = vld [vmem:[%s6801_s29 + $0x68] sm:$0xff]  }
  0xd4   : > { %6010 = vmatmul.mubr.msk.bf16.gmra.mrb[24].mxu1 %vm399_vm1, %v1527_v42  ;;  %6176 = vmatmul.mubr.msk.bf16.vlgmr.msra.gmra.mrb[0].mxu0 %vm399_vm1, %v4215_v52  ;;  %v4283_v42 = vshll.u32 %v6678_v32, 16  ;;  %v2017_v52 = vrot.slane %v6679_v43, 1  ;;  %v4330_v32 = vrot.slane %v4328_v23, 3  ;;  %v4343_v43 = vshrl.u32 %v6692_v34, 16 }
  0xd5   : > { %6013 = vmatprep.mubr.msk.bf16.mxu1 %vm399_vm1, %v1529_v46  ;;  %6212 = vmatpush3.bf16.msra.mxu0 %v4927_v55  ;;  %v4289_v46 = vshrl.u32 %v6680_v39, 16  ;;  %v4334_v39 = vshrl.u32 %v6690_v29, 16  ;;  %v4840_v23 = vrot.slane %v6701_v17, 3  ;;  %v2041_v29 = vrot.slane %v6704_v21, 1 }
  0xd6   : > { %6179 = vmatprep.mubr.msk.bf16.mxu0 %vm399_vm1, %v4224_v56  ;;  %v4285_v51 = vrot.slane %v4283_v42, 3  ;;  %v4294_v56 = vrot.slane %v4292_v47, 3  ;;  %v2020_v0 = vsel %vm1498_vm5, %v2017_v52, %v2019_v58  ;;  %v4331_v41 = vor.u32 %v4330_v32, %v4327_v31  ;;  %v6705_v31 = vld [vmem:[%s6801_s29 + $0x38] sm:$0xff]  }
  0xd7   : > { %v4291_v55 = vrot.slane %v4289_v46, 2  ;;  %v4336_v47 = vrot.slane %v4334_v39, 2  ;;  %v6708_v39 = vld [vmem:[%s6801_s29 + $0x98] ss:$0 sps:$4 sm:$0x11]  }
  0xd8   : > { %v4286_v40 = vor.u32 %v4285_v51, %v4282_v50  ;;  %v6694_v50 = vld [vmem:[%s6801_s29 + $0xa0] ss:$0 sps:$4 sm:$0x77]   ;;  %v4332_v51 = vsel %vm4189_vm6, %v4322_v35, %v4331_v41 }
  0xda   : > { %v4287_v4 = vsel %vm4189_vm6, %v4277_v44, %v4286_v40  ;;  %v4346_v44 = vshll.u32 %v6692_v34, 16  ;;  %v2624_v34 = vshll.u32 %v6710_v26, 16 }
  0xdc   : > { %6014 = vmatmul.mubr.msk.bf16.gmra.mrb[28].mxu1 %vm399_vm1, %v1531_v60  ;;  %6180 = vmatmul.mubr.msk.bf16.gmra.mrb[4].mxu0 %vm399_vm1, %v4233_v6  ;;  %v2018_v60 = vsel %vm1498_vm5, %v2015_v37, %v2017_v52  ;;  %v4303_v6 = vrot.slane %v4301_v62, 3  ;;  %v4345_v52 = vrot.slane %v4343_v43, 2  ;;  %v4348_v53 = vrot.slane %v4346_v44, 3  ;;  %v6698_v62 = vld [vmem:[%s6801_s29 + $0x70] sm:$0xff]  }
  0xdd   : > { %6017 = vmatprep.mubr.msk.bf16.mxu1 %vm399_vm1, %v1533_v38  ;;  %6183 = vmatprep.mubr.msk.bf16.mxu0 %vm399_vm1, %v4242_v8  ;;  %v4307_v38 = vshrl.u32 %v6684_v59, 16  ;;  %v2021_v8 = vrot.slane %v6683_v63, 1  ;;  %v4355_v59 = vshll.u32 %v6694_v50, 16  ;;  %v2626_v43 = vrot.slane %v2624_v34, 2  ;;  %v6714_v44 = vld [vmem:[%s6801_s29 + $0x70] sm:$0xff]  }
  0xde   : > { %v4304_v15 = vor.u32 %v4303_v6, %v4300_v5  ;;  %v2035_v5 = vrot.slane %v6698_v62, 1  ;;  %v6724_v34 = vld [vmem:[%s6801_s29 + $0x98] ss:$0 sps:$4 sm:$0x33]  }
  0xdf   : > { %v4309_v11 = vrot.slane %v4307_v38, 2  ;;  %v2022_v16 = vsel %vm1498_vm5, %v2019_v58, %v2021_v8  ;;  %v2024_v20 = vsel %vm1498_vm5, %v2021_v8, %v2023_v13  ;;  %v4352_v58 = vshrl.u32 %v6694_v50, 16 }
  0xe1   : > { %v4313_v19 = vor.u32 %v4312_v12, %v4309_v11 }
  0xe3   : > { %v4314_v30 = vsel %vm4189_vm6, %v4304_v15, %v4313_v19  ;;  %v4323_v46 = vsel %vm4189_vm6, %v4313_v19, %v4322_v35 }
  0xe4   : > { %6018 = vmatmul.mubr.msk.bf16.gmra.mrb[32].mxu1 %vm399_vm1, %v1535_v18  ;;  %6184 = vmatmul.mubr.msk.bf16.gmra.mrb[8].mxu0 %vm399_vm1, %v4251_v28  ;;  %v6687_v18 = vld [vmem:[%s6801_s29 + $0x48] sm:$0xff]  }
  0xe5   : > { %6023 = vmatprep.mubr.msk.bf16.mxu1 %vm399_vm1, %v2012_v24  ;;  %6187 = vmatprep.mubr.msk.bf16.mxu0 %vm399_vm1, %v4260_v33  ;;  %v6689_v24 = vld [vmem:[%s6801_s29 + $0x50] sm:$0xff]   ;;  %v2025_v28 = vrot.slane %v6687_v18, 1 }
  0xe6   : > { %v2027_v33 = vrot.slane %v6689_v24, 1 }
  0xe7   : > { %v2026_v37 = vsel %vm1498_vm5, %v2023_v13, %v2025_v28  ;;  %v6702_v13 = vld [vmem:[%s6801_s29 + $0x80] sm:$0xff]  }
  0xe8   : > { %v2028_v42 = vsel %vm1498_vm5, %v2025_v28, %v2027_v33  ;;  %v2039_v18 = vrot.slane %v6702_v13, 1  ;;  %v6703_v28 = vld [vmem:[%s6801_s29 + $0x30] sm:$0xff]  }
  0xe9   : > { %v4842_v35 = vrot.slane %v6703_v28, 3 }
  0xec   : > { %6024 = vmatmul.mubr.msk.bf16.vlgmr.msra.gmra.mrb[0].mxu1 %vm399_vm1, %v2014_v57  ;;  %6188 = vmatmul.mubr.msk.bf16.gmra.mrb[12].mxu0 %vm399_vm1, %v4269_v49  ;;  %v6691_v57 = vld [vmem:[%s6801_s29 + $0x58] sm:$0xff]  }
  0xed   : > { %6027 = vmatprep.mubr.msk.bf16.mxu1 %vm399_vm1, %v2016_v45  ;;  %6250 = vmatpush3.bf16.msra.mxu1 %v6786_v3  ;;  %v4295_v3 = vor.u32 %v4294_v56, %v4291_v55  ;;  %v6693_v45 = vld [vmem:[%s6801_s29 + $0x60] sm:$0xff]   ;;  %v2029_v49 = vrot.slane %v6691_v57, 1  ;;  %v4340_v55 = vor.u32 %v4339_v48, %v4336_v47  ;;  %v4844_v57 = vrot.slane %v6705_v31, 3 }
  0xee   : > { %6191 = vmatprep.mubr.msk.bf16.mxu0 %vm399_vm1, %v4278_v54  ;;  %v2031_v54 = vrot.slane %v6693_v45, 1  ;;  %v4843_v45 = vsel %vm4834_vm7, %v4840_v23, %v4842_v35  ;;  %v2045_v47 = vrot.slane %v6708_v39, 1  ;;  %v2630_v48 = vshrl.u32 %v6712_v7, 16 }
  0xef   : > { %v4296_v10 = vsel %vm4189_vm6, %v4286_v40, %v4295_v3  ;;  %v4305_v25 = vsel %vm4189_vm6, %v4295_v3, %v4304_v15  ;;  %v2030_v56 = vsel %vm1498_vm5, %v2027_v33, %v2029_v49  ;;  %v6695_v40 = vld [vmem:[%s6801_s29 + $0x68] sm:$0xff]   ;;  %v4341_v63 = vsel %vm4189_vm6, %v4331_v41, %v4340_v55  ;;  %v6699_v15 = vld [vmem:[%s6801_s29 + $0x20] sm:$0xff]  }
  0xf0   : > { %v2032_v61 = vsel %vm1498_vm5, %v2029_v49, %v2031_v54  ;;  %v4354_v3 = vrot.slane %v4352_v58, 2  ;;  %v2033_v38 = vrot.slane %v6695_v40, 1  ;;  %v4838_v19 = vrot.slane %v6699_v15, 3  ;;  %v6716_v40 = vld [vmem:[%s6801_s29 + $0x78] sm:$0xff]  }
  0xf1   : > { %v2621_v33 = vshrl.u32 %v6710_v26, 16  ;;  %v2633_v49 = vshll.u32 %v6712_v7, 16  ;;  %v4845_v50 = vsel %vm4834_vm7, %v4842_v35, %v4844_v57  ;;  %v2632_v58 = vrot.slane %v2630_v48, 1  ;;  %v6717_v26 = vld [vmem:[%s6801_s29 + $0x68] sm:$0xff]  }
  0xf2   : > { %v2034_v8 = vsel %vm1498_vm5, %v2031_v54, %v2033_v38  ;;  %v2036_v12 = vsel %vm1498_vm5, %v2033_v38, %v2035_v5  ;;  %v2642_v54 = vshll.u32 %v6714_v44, 16  ;;  %v6711_v38 = vld [vmem:[%s6801_s29 + $0x50] sm:$0xff]   ;;  %v4856_v35 = vrot.slane %v6717_v26, 3 }
  0xf4   : > { %6028 = vmatmul.mubr.msk.bf16.gmra.mrb[4].mxu1 %vm399_vm1, %v2018_v60  ;;  %6192 = vmatmul.mubr.msk.bf16.gmra.mrb[16].mxu0 %vm399_vm1, %v4287_v4  ;;  %v4349_v60 = vor.u32 %v4348_v53, %v4345_v52  ;;  %v6697_v4 = vld [vmem:[%s6801_s29 + $0x18] sm:$0xff]   ;;  %v2639_v53 = vshrl.u32 %v6714_v44, 16  ;;  %v2687_v44 = vshll.u32 %v6724_v34, 16 }
  0xf5   : > { %6031 = vmatprep.mubr.msk.bf16.mxu1 %vm399_vm1, %v2020_v0  ;;  %6195 = vmatprep.mubr.msk.bf16.mxu0 %vm399_vm1, %v4296_v10  ;;  %v4357_v0 = vrot.slane %v4355_v59, 3  ;;  %v4835_v10 = vrot.slane %v6696_v2, 3  ;;  %v4836_v11 = vrot.slane %v6697_v4, 3  ;;  %v2635_v59 = vrot.slane %v2633_v49, 2 }
  0xf6   : > { %v4350_v1 = vsel %vm4189_vm6, %v4340_v55, %v4349_v60  ;;  %v2641_v62 = vrot.slane %v2639_v53, 1  ;;  %v2648_v2 = vshrl.u32 %v6716_v40, 16  ;;  %v2651_v4 = vshll.u32 %v6716_v40, 16 }
  0xf7   : > { %v4358_v6 = vor.u32 %v4357_v0, %v4354_v3  ;;  %v4837_v22 = vsel %vm4834_vm7, %v4835_v10, %v4836_v11  ;;  %v4839_v27 = vsel %vm4834_vm7, %v4836_v11, %v4838_v19  ;;  %v6718_v3 = vld [vmem:[%s6801_s29 + $0x80] sm:$0xff]   ;;  %v4850_v10 = vrot.slane %v6711_v38, 3 }
  0xf8   : > { %v2653_v13 = vrot.slane %v2651_v4, 2  ;;  %v6728_v4 = vld [vmem:[%s6801_s29 + $0xa0] ss:$0 sps:$4 sm:$0x77]  }
  0xf9   : > { %v4359_v14 = vsel %vm4189_vm6, %v4349_v60, %v4358_v6  ;;  %v6713_v6 = vld [vmem:[%s6801_s29 + $0x58] sm:$0xff]  }
  0xfa   : > { %v4852_v15 = vrot.slane %v6713_v6, 3  ;;  %v4870_v6 = vrot.slane %v6728_v4, 3 }
  0xfc   : > { %6032 = vmatmul.mubr.msk.bf16.gmra.mrb[8].mxu1 %vm399_vm1, %v2022_v16  ;;  %6196 = vmatmul.mubr.msk.bf16.gmra.mrb[20].mxu0 %vm399_vm1, %v4305_v25  ;;  %v2037_v16 = vrot.slane %v6700_v9, 1  ;;  %v6706_v25 = vld [vmem:[%s6801_s29 + $0x90] sm:$0xff]   ;;  %v2660_v9 = vshll.u32 %v6718_v3, 16 }
  0xfd   : > { %6035 = vmatprep.mubr.msk.bf16.mxu1 %vm399_vm1, %v2024_v20  ;;  %6199 = vmatprep.mubr.msk.bf16.mxu0 %vm399_vm1, %v4314_v30  ;;  %v4841_v30 = vsel %vm4834_vm7, %v4838_v19, %v4840_v23  ;;  %v2043_v32 = vrot.slane %v6706_v25, 1  ;;  %v4853_v25 = vsel %vm4834_vm7, %v4850_v10, %v4852_v15 }
  0xfe   : > { %v2038_v20 = vsel %vm1498_vm5, %v2035_v5, %v2037_v16  ;;  %v2040_v24 = vsel %vm1498_vm5, %v2037_v16, %v2039_v18  ;;  %v2662_v17 = vrot.slane %v2660_v9, 2 }
  0xff   : > { %v2044_v41 = vsel %vm1498_vm5, %v2041_v29, %v2043_v32 }
 0x104   : > { %6036 = vmatmul.mubr.msk.bf16.gmra.mrb[12].mxu1 %vm399_vm1, %v2026_v37  ;;  %6200 = vmatmul.mubr.msk.bf16.gmra.mrb[24].mxu0 %vm399_vm1, %v4323_v46  ;;  %v2042_v37 = vsel %vm1498_vm5, %v2039_v18, %v2041_v29  ;;  %v6707_v46 = vld [vmem:[%s6801_s29 + $0x40] sm:$0xff]   ;;  %v6722_v18 = vld [vmem:[%s6801_s29 + $0x90] sm:$0xff]  }
 0x105   : > { %6039 = vmatprep.mubr.msk.bf16.mxu1 %vm399_vm1, %v2028_v42  ;;  %6203 = vmatprep.mubr.msk.bf16.mxu0 %vm399_vm1, %v4332_v51  ;;  %v2623_v42 = vrot.slane %v2621_v33, 1  ;;  %v6709_v51 = vld [vmem:[%s6801_s29 + $0x48] sm:$0xff]   ;;  %v4846_v55 = vrot.slane %v6707_v46, 3  ;;  %v2675_v28 = vshrl.u32 %v6722_v18, 16  ;;  %v2678_v29 = vshll.u32 %v6722_v18, 16  ;;  %v6721_v46 = vld [vmem:[%s6801_s29 + $0x78] sm:$0xff]  }
 0x106   : > { %v4848_v60 = vrot.slane %v6709_v51, 3  ;;  %v2689_v51 = vrot.slane %v2687_v44, 2 }
 0x107   : > { %v2627_v52 = vor.u32 %v2626_v43, %v2623_v42  ;;  %v4847_v0 = vsel %vm4834_vm7, %v4844_v57, %v4846_v55  ;;  %v2677_v39 = vrot.slane %v2675_v28, 1  ;;  %v2680_v7 = vrot.slane %v2678_v29, 2 }
 0x108   : > { %v4849_v5 = vsel %vm4834_vm7, %v4846_v55, %v4848_v60  ;;  %v4851_v19 = vsel %vm4834_vm7, %v4848_v60, %v4850_v10  ;;  %v2684_v43 = vshrl.u32 %v6724_v34, 16  ;;  %v6723_v55 = vld [vmem:[%s6801_s29 + $0x80] sm:$0xff]   ;;  %v7354_v29 = vstv %s5178_s16 }
 0x109   : > { %v4862_v40 = vrot.slane %v6723_v55, 3 }
 0x10c   : > { %6040 = vmatmul.mubr.msk.bf16.gmra.mrb[16].mxu1 %vm399_vm1, %v2030_v56  ;;  %6204 = vmatmul.mubr.msk.bf16.gmra.mrb[28].mxu0 %vm399_vm1, %v4341_v63  ;;  %v2046_v56 = vsel %vm1498_vm5, %v2043_v32, %v2045_v47  ;;  %v2644_v63 = vrot.slane %v2642_v54, 2  ;;  %v2681_v47 = vor.u32 %v2680_v7, %v2677_v39 }
 0x10d   : > { %6043 = vmatprep.mubr.msk.bf16.mxu1 %vm399_vm1, %v2032_v61  ;;  %6207 = vmatprep.mubr.msk.bf16.mxu0 %vm399_vm1, %v4350_v1  ;;  %v2628_v61 = vsel %vm2521_vm2, %v6873_v36, %v2627_v52  ;;  %v2636_v1 = vor.u32 %v2635_v59, %v2632_v58  ;;  %v2657_v36 = vshrl.u32 %v6718_v3, 16  ;;  %v6725_v59 = vld [vmem:[%s6801_s29 + $0x88] sm:$0xff]  }
 0x10f   : > { %v2637_v11 = vsel %vm2521_vm2, %v2627_v52, %v2636_v1  ;;  %v4860_v52 = vrot.slane %v6721_v46, 3 }
 0x114   : > { %6044 = vmatmul.mubr.msk.bf16.gmra.mrb[20].mxu1 %vm399_vm1, %v2034_v8  ;;  %6208 = vmatmul.mubr.msk.bf16.gmra.mrb[32].mxu0 %vm399_vm1, %v4359_v14  ;;  %v2645_v8 = vor.u32 %v2644_v63, %v2641_v62  ;;  %v6720_v14 = vld [vmem:[%s6801_s29 + $0x88] sm:$0xff]   ;;  %v4863_v62 = vsel %vm4834_vm7, %v4860_v52, %v4862_v40  ;;  %v6726_v63 = vld [vmem:[%s6801_s29 + $0x90] sm:$0xff]  }
 0x115   : > { %6047 = vmatprep.mubr.msk.bf16.mxu1 %vm399_vm1, %v2036_v12  ;;  %6213 = vmatprep.mubr.msk.bf16.mxu0 %vm399_vm1, %v4837_v22  ;;  %v2650_v12 = vrot.slane %v2648_v2, 1  ;;  %v2659_v22 = vrot.slane %v2657_v36, 1  ;;  %v2666_v23 = vshrl.u32 %v6720_v14, 16  ;;  %v4866_v38 = vrot.slane %v6726_v63, 3 }
 0x116   : > { %v2646_v16 = vsel %vm2521_vm2, %v2636_v1, %v2645_v8 }
 0x117   : > { %v2654_v21 = vor.u32 %v2653_v13, %v2650_v12  ;;  %v2668_v32 = vrot.slane %v2666_v23, 1 }
 0x119   : > { %v2655_v31 = vsel %vm2521_vm2, %v2645_v8, %v2654_v21 }
 0x11c   : > { %6048 = vmatmul.mubr.msk.bf16.gmra.mrb[24].mxu1 %vm399_vm1, %v2038_v20  ;;  %6214 = vmatmul.mubr.msk.bf16.vlgmr.msra.gmra.mrb[0].mxu0 %vm399_vm1, %v4839_v27  ;;  %v6715_v20 = vld [vmem:[%s6801_s29 + $0x60] sm:$0xff]   ;;  %v2663_v27 = vor.u32 %v2662_v17, %v2659_v22 }
 0x11d   : > { %6051 = vmatprep.mubr.msk.bf16.mxu1 %vm399_vm1, %v2040_v24  ;;  %6217 = vmatprep.mubr.msk.bf16.mxu0 %vm399_vm1, %v4841_v30  ;;  %v2669_v24 = vshll.u32 %v6720_v14, 16  ;;  %v4854_v30 = vrot.slane %v6715_v20, 3 }
 0x11f   : > { %v2671_v33 = vrot.slane %v2669_v24, 2  ;;  %v4855_v57 = vsel %vm4834_vm7, %v4852_v15, %v4854_v30 }
 0x121   : > { %v2672_v42 = vor.u32 %v2671_v33, %v2668_v32  ;;  %v7359_v32 = vld [vmem:[%s7488_s2] ss:$0 sm:$0xff] }
 0x123   : > { %v2673_v49 = vsel %vm2521_vm2, %v2663_v27, %v2672_v42  ;;  %v2682_v53 = vsel %vm2521_vm2, %v2672_v42, %v2681_v47 }
 0x124   : > { %6052 = vmatmul.mubr.msk.bf16.gmra.mrb[28].mxu1 %vm399_vm1, %v2042_v37  ;;  %6218 = vmatmul.mubr.msk.bf16.gmra.mrb[4].mxu0 %vm399_vm1, %v4843_v45  ;;  %v2664_v37 = vsel %vm2521_vm2, %v2654_v21, %v2663_v27  ;;  %v4857_v45 = vsel %vm4834_vm7, %v4854_v30, %v4856_v35 }
 0x125   : > { %6055 = vmatprep.mubr.msk.bf16.mxu1 %vm399_vm1, %v2044_v41  ;;  %6221 = vmatprep.mubr.msk.bf16.mxu0 %vm399_vm1, %v4845_v50  ;;  %v6719_v41 = vld [vmem:[%s6801_s29 + $0x70] sm:$0xff]   ;;  %v2686_v50 = vrot.slane %v2684_v43, 1 }
 0x126   : > { %v4858_v48 = vrot.slane %v6719_v41, 3 }
 0x128   : > { %v4859_v54 = vsel %vm4834_vm7, %v4856_v35, %v4858_v48  ;;  %v4861_v58 = vsel %vm4834_vm7, %v4858_v48, %v4860_v52 }
 0x12c   : > { %6056 = vmatmul.mubr.msk.bf16.gmra.mrb[32].mxu1 %vm399_vm1, %v2046_v56  ;;  %6222 = vmatmul.mubr.msk.bf16.gmra.mrb[8].mxu0 %vm399_vm1, %v4847_v0  ;;  %v2690_v56 = vor.u32 %v2689_v51, %v2686_v50  ;;  %v6727_v0 = vld [vmem:[%s6801_s29 + $0x98] sm:$0xff]  }
 0x12d   : > { %6081 = vmatprep.mubr.msk.bf16.mxu1 %vm399_vm1, %v2628_v61  ;;  %6225 = vmatprep.mubr.msk.bf16.mxu0 %vm399_vm1, %v4849_v5  ;;  %v4864_v61 = vrot.slane %v6725_v59, 3  ;;  %v4868_v1 = vrot.slane %v6727_v0, 3 }
 0x12e   : > { %v2691_v60 = vsel %vm2521_vm2, %v2681_v47, %v2690_v56 }
 0x12f   : > { %v4865_v3 = vsel %vm4834_vm7, %v4862_v40, %v4864_v61  ;;  %v4867_v2 = vsel %vm4834_vm7, %v4864_v61, %v4866_v38  ;;  %v4869_v5 = vsel %vm4834_vm7, %v4866_v38, %v4868_v1  ;;  %v4871_v8 = vsel %vm4834_vm7, %v4868_v1, %v4870_v6 }
 0x134   : > { %6082 = vmatmul.mubr.msk.bf16.vlgmr.msra.gmra.mrb[20].mxu1 %vm399_vm1, %v2637_v11  ;;  %6226 = vmatmul.mubr.msk.bf16.gmra.mrb[12].mxu0 %vm399_vm1, %v4851_v19 }
 0x135   : > { %6085 = vmatprep.mubr.msk.bf16.mxu1 %vm399_vm1, %v2646_v16  ;;  %6229 = vmatprep.mubr.msk.bf16.mxu0 %vm399_vm1, %v4853_v25 }
 0x13c   : > { %6086 = vmatmul.mubr.msk.bf16.gmra.mrb[24].mxu1 %vm399_vm1, %v2655_v31  ;;  %6230 = vmatmul.mubr.msk.bf16.gmra.mrb[16].mxu0 %vm399_vm1, %v4855_v57 }
 0x13d   : > { %6089 = vmatprep.mubr.msk.bf16.mxu1 %vm399_vm1, %v2664_v37  ;;  %6233 = vmatprep.mubr.msk.bf16.mxu0 %vm399_vm1, %v4857_v45 }
 0x144   : > { %6090 = vmatmul.mubr.msk.bf16.gmra.mrb[28].mxu1 %vm399_vm1, %v2673_v49  ;;  %6234 = vmatmul.mubr.msk.bf16.gmra.mrb[20].mxu0 %vm399_vm1, %v4859_v54 }
 0x145   : > { %6093 = vmatprep.mubr.msk.bf16.mxu1 %vm399_vm1, %v2682_v53  ;;  %6237 = vmatprep.mubr.msk.bf16.mxu0 %vm399_vm1, %v4861_v58 }
 0x14c   : > { %6094 = vmatmul.mubr.msk.bf16.gmra.mrb[32].mxu1 %vm399_vm1, %v2691_v60  ;;  %6238 = vmatmul.mubr.msk.bf16.gmra.mrb[24].mxu0 %vm399_vm1, %v4863_v62 }
 0x14d   : > { %6241 = vmatprep.mubr.msk.bf16.mxu0 %vm399_vm1, %v4865_v3 }
 0x154   : > { %6242 = vmatmul.mubr.msk.bf16.gmra.mrb[28].mxu0 %vm399_vm1, %v4867_v2 }
 0x155   : > { %6245 = vmatprep.mubr.msk.bf16.mxu0 %vm399_vm1, %v4869_v5 }
 0x15c   : > { %6246 = vmatmul.mubr.msk.bf16.gmra.mrb[32].mxu0 %vm399_vm1, %v4871_v8 }
 0x1bf   : > { %v6025_v36 = vpop.f32.mrb[0].mxu1 }
 0x1c0   : > { %v2138_v9 = vpop.f32.mrb[1].mxu1 }
 0x1c1   : > { %v6026_v10 = vpop.f32.mrb[2].mxu1 }
 0x1c2   : > { %v2141_v11 = vpop.f32.mrb[3].mxu1 }
 0x1c7   : > { %v6029_v12 = vpop.f32.mrb[4].mxu1 }
 0x1c8   : > { %v2154_v13 = vpop.f32.mrb[5].mxu1 }
 0x1c9   : > { %v6030_v14 = vpop.f32.mrb[6].mxu1 }
 0x1ca   : > { %v2157_v15 = vpop.f32.mrb[7].mxu1 }
 0x1cf   : > { %v6033_v16 = vpop.f32.mrb[8].mxu1 }
 0x1d0   : > { %v2170_v22 = vpop.f32.mrb[9].mxu1 }
 0x1d1   : > { %v6034_v17 = vpop.f32.mrb[10].mxu1 }
 0x1d2   : > { %v7335_v18 = vpop.f32.mrb[11].mxu1 }
 0x1d7   : > { %v7337_v19 = vpop.f32.mrb[12].mxu1 }
 0x1d8   : > { %v7339_v20 = vpop.f32.mrb[13].mxu1 }
 0x1d9   : > { %v7341_v21 = vpop.f32.mrb[14].mxu1 }
 0x1da   : > { %v7343_v23 = vpop.f32.mrb[15].mxu1 }
 0x1df   : > { %v7345_v24 = vpop.f32.mrb[16].mxu1 }
 0x1e0   : > { %v7347_v25 = vpop.f32.mrb[17].mxu1 }
 0x1e1   : > { %v7349_v26 = vpop.f32.mrb[18].mxu1 }
 0x1e2   : > { %v7351_v27 = vpop.f32.mrb[19].mxu1 }
 0x1ef   : > { %v6215_v28 = vpop.f32.mrb[0].mxu0 }
 0x1f0   : > { %v6251_v30 = vadd.f32 %v6215_v28, %v6025_v36  ;;  %v4963_v31 = vpop.f32.mrb[1].mxu0 }
 0x1f1   : > { %v6252_v33 = vadd.f32 %v4963_v31, %v2138_v9  ;;  %v6216_v34 = vpop.f32.mrb[2].mxu0 }
 0x1f2   : > { %v5218_v35 = vmul.f32 %v6251_v30, %v7354_v29  ;;  %v6253_v37 = vadd.f32 %v6216_v34, %v6026_v10  ;;  %v4966_v39 = vpop.f32.mrb[3].mxu0 }
 0x1f3   : > { %v5216_v7 = vmul.f32 %v6252_v33, %v7354_v29  ;;  %v6254_v57 = vadd.f32 %v4966_v39, %v2141_v11 }
 0x1f4   : > { %v5261_v41 = vadd.f32 %v7359_v32, %v5218_v35  ;;  %v5219_v42 = vmul.f32 %v6253_v37, %v7354_v29 }
 0x1f5   : > { %v5259_v43 = vadd.f32 %v7359_v32, %v5216_v7  ;;  %v5217_v44 = vmul.f32 %v6254_v57, %v7354_v29 }
 0x1f6   : > { %5297 = vst [vmem:[%s7365_s18 + $0x10] sm:$0xff] %v5261_v41  ;;  %v5262_v45 = vadd.f32 %v7359_v32, %v5219_v42 }
 0x1f7   : > { %5295 = vst [vmem:[%s7365_s18] sm:$0xff] %v5259_v43  ;;  %v5260_v46 = vadd.f32 %v7359_v32, %v5217_v44  ;;  %v6219_v47 = vpop.f32.mrb[4].mxu0 }
 0x1f8   : > { %5298 = vst [vmem:[%s7365_s18 + $0x18] sm:$0xff] %v5262_v45  ;;  %v6255_v48 = vadd.f32 %v6219_v47, %v6029_v12  ;;  %v4979_v49 = vpop.f32.mrb[5].mxu0 }
 0x1f9   : > { %5296 = vst [vmem:[%s7365_s18 + $0x8] sm:$0xff] %v5260_v46  ;;  %v6256_v50 = vadd.f32 %v4979_v49, %v2154_v13  ;;  %v6220_v51 = vpop.f32.mrb[6].mxu0 }
 0x1fa   : > { %v5222_v52 = vmul.f32 %v6255_v48, %v7354_v29  ;;  %v6257_v53 = vadd.f32 %v6220_v51, %v6030_v14  ;;  %v4982_v54 = vpop.f32.mrb[7].mxu0 }
 0x1fb   : > { %v5220_v55 = vmul.f32 %v6256_v50, %v7354_v29  ;;  %v6258_v56 = vadd.f32 %v4982_v54, %v2157_v15 }
 0x1fc   : > { %v5265_v58 = vadd.f32 %v7359_v32, %v5222_v52  ;;  %v5223_v59 = vmul.f32 %v6257_v53, %v7354_v29 }
 0x1fd   : > { %v5263_v40 = vadd.f32 %v7359_v32, %v5220_v55  ;;  %v5221_v60 = vmul.f32 %v6258_v56, %v7354_v29 }
 0x1fe   : > { %5301 = vst [vmem:[%s7365_s18 + $0x30] sm:$0xff] %v5265_v58  ;;  %v5266_v61 = vadd.f32 %v7359_v32, %v5223_v59 }
 0x1ff   : > { %5299 = vst [vmem:[%s7365_s18 + $0x20] sm:$0xff] %v5263_v40  ;;  %v5264_v62 = vadd.f32 %v7359_v32, %v5221_v60  ;;  %v6223_v63 = vpop.f32.mrb[8].mxu0 }
 0x200   : > { %5302 = vst [vmem:[%s7365_s18 + $0x38] sm:$0xff] %v5266_v61  ;;  %v6259_v3 = vadd.f32 %v6223_v63, %v6033_v16  ;;  %v4995_v0 = vpop.f32.mrb[9].mxu0 }
 0x201   : > { %5300 = vst [vmem:[%s7365_s18 + $0x28] sm:$0xff] %v5264_v62  ;;  %v6260_v38 = vadd.f32 %v4995_v0, %v2170_v22  ;;  %v6224_v1 = vpop.f32.mrb[10].mxu0 }
 0x202   : > { %v5226_v2 = vmul.f32 %v6259_v3, %v7354_v29  ;;  %v6261_v4 = vadd.f32 %v6224_v1, %v6034_v17  ;;  %v4998_v5 = vpop.f32.mrb[11].mxu0 }
 0x203   : > { %v5224_v6 = vmul.f32 %v6260_v38, %v7354_v29  ;;  %v6262_v8 = vadd.f32 %v4998_v5, %v7335_v18 }
 0x204   : > { %v5269_v9 = vadd.f32 %v7359_v32, %v5226_v2  ;;  %v5227_v10 = vmul.f32 %v6261_v4, %v7354_v29 }
 0x205   : > { %v5267_v12 = vadd.f32 %v7359_v32, %v5224_v6  ;;  %v5225_v13 = vmul.f32 %v6262_v8, %v7354_v29 }
 0x206   : > { %5305 = vst [vmem:[%s7365_s18 + $0x50] sm:$0xff] %v5269_v9  ;;  %v5270_v15 = vadd.f32 %v7359_v32, %v5227_v10 }
 0x207   : > { %v6083_v36 = vpop.f32.mrb[20].mxu1  ;;  %5303 = vst [vmem:[%s7365_s18 + $0x40] sm:$0xff] %v5267_v12  ;;  %v5268_v22 = vadd.f32 %v7359_v32, %v5225_v13  ;;  %v6227_v17 = vpop.f32.mrb[12].mxu0 }
 0x208   : > { %v2863_v11 = vpop.f32.mrb[21].mxu1  ;;  %5306 = vst [vmem:[%s7365_s18 + $0x58] sm:$0xff] %v5270_v15  ;;  %v6263_v18 = vadd.f32 %v6227_v17, %v7337_v19  ;;  %v5011_v28 = vpop.f32.mrb[13].mxu0 }
 0x209   : > { %v6084_v14 = vpop.f32.mrb[22].mxu1  ;;  %5304 = vst [vmem:[%s7365_s18 + $0x48] sm:$0xff] %v5268_v22  ;;  %v6264_v30 = vadd.f32 %v5011_v28, %v7339_v20  ;;  %v6228_v31 = vpop.f32.mrb[14].mxu0 }
 0x20a   : > { %v2866_v16 = vpop.f32.mrb[23].mxu1  ;;  %v5230_v33 = vmul.f32 %v6263_v18, %v7354_v29  ;;  %v6265_v34 = vadd.f32 %v6228_v31, %v7341_v21  ;;  %v5014_v35 = vpop.f32.mrb[15].mxu0 }
 0x20b   : > { %v5228_v37 = vmul.f32 %v6264_v30, %v7354_v29  ;;  %v6266_v39 = vadd.f32 %v5014_v35, %v7343_v23 }
 0x20c   : > { %v5273_v19 = vadd.f32 %v7359_v32, %v5230_v33  ;;  %v5231_v57 = vmul.f32 %v6265_v34, %v7354_v29 }
 0x20d   : > { %v5271_v20 = vadd.f32 %v7359_v32, %v5228_v37  ;;  %v5229_v42 = vmul.f32 %v6266_v39, %v7354_v29 }
 0x20e   : > { %5309 = vst [vmem:[%s7365_s18 + $0x70] sm:$0xff] %v5273_v19  ;;  %v5274_v21 = vadd.f32 %v7359_v32, %v5231_v57 }
 0x20f   : > { %v6087_v7 = vpop.f32.mrb[24].mxu1  ;;  %5307 = vst [vmem:[%s7365_s18 + $0x60] sm:$0xff] %v5271_v20  ;;  %v5272_v45 = vadd.f32 %v7359_v32, %v5229_v42  ;;  %v6231_v23 = vpop.f32.mrb[16].mxu0 }
 0x210   : > { %v2879_v41 = vpop.f32.mrb[25].mxu1  ;;  %5310 = vst [vmem:[%s7365_s18 + $0x78] sm:$0xff] %v5274_v21  ;;  %v6267_v46 = vadd.f32 %v6231_v23, %v7345_v24  ;;  %v5027_v47 = vpop.f32.mrb[17].mxu0 }
 0x211   : > { %v6088_v43 = vpop.f32.mrb[26].mxu1  ;;  %5308 = vst [vmem:[%s7365_s18 + $0x68] sm:$0xff] %v5272_v45  ;;  %v6268_v48 = vadd.f32 %v5027_v47, %v7347_v25  ;;  %v6232_v49 = vpop.f32.mrb[18].mxu0 }
 0x212   : > { %v2882_v44 = vpop.f32.mrb[27].mxu1  ;;  %v5234_v50 = vmul.f32 %v6267_v46, %v7354_v29  ;;  %v6269_v51 = vadd.f32 %v6232_v49, %v7349_v26  ;;  %v5030_v52 = vpop.f32.mrb[19].mxu0 }
 0x213   : > { %v5232_v53 = vmul.f32 %v6268_v48, %v7354_v29  ;;  %v6270_v54 = vadd.f32 %v5030_v52, %v7351_v27 }
 0x214   : > { %v5277_v24 = vadd.f32 %v7359_v32, %v5234_v50  ;;  %v5235_v56 = vmul.f32 %v6269_v51, %v7354_v29 }
 0x215   : > { %v5275_v25 = vadd.f32 %v7359_v32, %v5232_v53  ;;  %v5233_v59 = vmul.f32 %v6270_v54, %v7354_v29 }
 0x216   : > { %5313 = vst [vmem:[%s7365_s18 + $0x90] sm:$0xff] %v5277_v24  ;;  %v5278_v26 = vadd.f32 %v7359_v32, %v5235_v56 }
 0x217   : > { %v6091_v55 = vpop.f32.mrb[28].mxu1  ;;  %5311 = vst [vmem:[%s7365_s18 + $0x80] sm:$0xff] %v5275_v25  ;;  %v5276_v61 = vadd.f32 %v7359_v32, %v5233_v59  ;;  %v6235_v27 = vpop.f32.mrb[20].mxu0 }
 0x218   : > { %v2895_v58 = vpop.f32.mrb[29].mxu1  ;;  %5314 = vst [vmem:[%s7365_s18 + $0x98] sm:$0xff] %v5278_v26  ;;  %v6271_v62 = vadd.f32 %v6235_v27, %v6083_v36  ;;  %v5043_v63 = vpop.f32.mrb[21].mxu0 }
 0x219   : > { %v6092_v40 = vpop.f32.mrb[30].mxu1  ;;  %5312 = vst [vmem:[%s7365_s18 + $0x88] sm:$0xff] %v5276_v61  ;;  %v6272_v3 = vadd.f32 %v5043_v63, %v2863_v11  ;;  %v6236_v0 = vpop.f32.mrb[22].mxu0 }
 0x21a   : > { %v2898_v60 = vpop.f32.mrb[31].mxu1  ;;  %v5238_v38 = vmul.f32 %v6271_v62, %v7354_v29  ;;  %v6273_v1 = vadd.f32 %v6236_v0, %v6084_v14  ;;  %v5046_v2 = vpop.f32.mrb[23].mxu0 }
 0x21b   : > { %v5236_v4 = vmul.f32 %v6272_v3, %v7354_v29  ;;  %v6274_v5 = vadd.f32 %v5046_v2, %v2866_v16 }
 0x21c   : > { %v5281_v8 = vadd.f32 %v7359_v32, %v5238_v38  ;;  %v5239_v36 = vmul.f32 %v6273_v1, %v7354_v29 }
 0x21d   : > { %v5279_v10 = vadd.f32 %v7359_v32, %v5236_v4  ;;  %v5237_v11 = vmul.f32 %v6274_v5, %v7354_v29 }
 0x21e   : > { %5317 = vst [vmem:[%s7365_s18 + $0xb0] sm:$0xff] %v5281_v8  ;;  %v5282_v13 = vadd.f32 %v7359_v32, %v5239_v36 }
 0x21f   : > { %v6095_v6 = vpop.f32.mrb[32].mxu1  ;;  %5315 = vst [vmem:[%s7365_s18 + $0xa0] sm:$0xff] %v5279_v10  ;;  %v5280_v15 = vadd.f32 %v7359_v32, %v5237_v11  ;;  %v6239_v16 = vpop.f32.mrb[24].mxu0 }
 0x220   : > { %v2911_v9 = vpop.f32.mrb[33].mxu1  ;;  %5318 = vst [vmem:[%s7365_s18 + $0xb8] sm:$0xff] %v5282_v13  ;;  %v6275_v22 = vadd.f32 %v6239_v16, %v6087_v7  ;;  %v5059_v17 = vpop.f32.mrb[25].mxu0 }
 0x221   : > { %v6096_v12 = vpop.f32.mrb[34].mxu1  ;;  %5316 = vst [vmem:[%s7365_s18 + $0xa8] sm:$0xff] %v5280_v15  ;;  %v6276_v18 = vadd.f32 %v5059_v17, %v2879_v41  ;;  %v6240_v28 = vpop.f32.mrb[26].mxu0 }
 0x222   : > { %v2914_v14 = vpop.f32.mrb[35].mxu1  ;;  %v5242_v30 = vmul.f32 %v6275_v22, %v7354_v29  ;;  %v6277_v31 = vadd.f32 %v6240_v28, %v6088_v43  ;;  %v5062_v33 = vpop.f32.mrb[27].mxu0 }
 0x223   : > { %v5240_v34 = vmul.f32 %v6276_v18, %v7354_v29  ;;  %v6278_v35 = vadd.f32 %v5062_v33, %v2882_v44 }
 0x224   : > { %v5285_v37 = vadd.f32 %v7359_v32, %v5242_v30  ;;  %v5243_v39 = vmul.f32 %v6277_v31, %v7354_v29 }
 0x225   : > { %v5283_v7 = vadd.f32 %v7359_v32, %v5240_v34  ;;  %v5241_v19 = vmul.f32 %v6278_v35, %v7354_v29 }
 0x226   : > { %5321 = vst [vmem:[%s7365_s18 + $0xd0] sm:$0xff] %v5285_v37  ;;  %v5286_v57 = vadd.f32 %v7359_v32, %v5243_v39 }
 0x227   : > { %5319 = vst [vmem:[%s7365_s18 + $0xc0] sm:$0xff] %v5283_v7  ;;  %v5284_v41 = vadd.f32 %v7359_v32, %v5241_v19  ;;  %v6243_v20 = vpop.f32.mrb[28].mxu0 }
 0x228   : > { %5322 = vst [vmem:[%s7365_s18 + $0xd8] sm:$0xff] %v5286_v57  ;;  %v6279_v42 = vadd.f32 %v6243_v20, %v6091_v55  ;;  %v5075_v43 = vpop.f32.mrb[29].mxu0 }
 0x229   : > { %5320 = vst [vmem:[%s7365_s18 + $0xc8] sm:$0xff] %v5284_v41  ;;  %v6280_v21 = vadd.f32 %v5075_v43, %v2895_v58  ;;  %v6244_v44 = vpop.f32.mrb[30].mxu0 }
 0x22a   : > { %v5246_v45 = vmul.f32 %v6279_v42, %v7354_v29  ;;  %v6281_v23 = vadd.f32 %v6244_v44, %v6092_v40  ;;  %v5078_v46 = vpop.f32.mrb[31].mxu0 }
 0x22b   : > { %v5244_v47 = vmul.f32 %v6280_v21, %v7354_v29  ;;  %v6282_v48 = vadd.f32 %v5078_v46, %v2898_v60 }
 0x22c   : > { %v5289_v49 = vadd.f32 %v7359_v32, %v5246_v45  ;;  %v5247_v50 = vmul.f32 %v6281_v23, %v7354_v29 }
 0x22d   : > { %v5287_v51 = vadd.f32 %v7359_v32, %v5244_v47  ;;  %v5245_v52 = vmul.f32 %v6282_v48, %v7354_v29 }
 0x22e   : > { %5325 = vst [vmem:[%s7365_s18 + $0xf0] sm:$0xff] %v5289_v49  ;;  %v5290_v53 = vadd.f32 %v7359_v32, %v5247_v50 }
 0x22f   : > { %5323 = vst [vmem:[%s7365_s18 + $0xe0] sm:$0xff] %v5287_v51  ;;  %v5288_v54 = vadd.f32 %v7359_v32, %v5245_v52  ;;  %v6247_v55 = vpop.f32.mrb[32].mxu0 }
 0x230   : > { %5326 = vst [vmem:[%s7365_s18 + $0xf8] sm:$0xff] %v5290_v53  ;;  %v6283_v24 = vadd.f32 %v6247_v55, %v6095_v6  ;;  %v5091_v56 = vpop.f32.mrb[33].mxu0 }
 0x231   : > { %5324 = vst [vmem:[%s7365_s18 + $0xe8] sm:$0xff] %v5288_v54  ;;  %v6284_v58 = vadd.f32 %v5091_v56, %v2911_v9  ;;  %v6248_v25 = vpop.f32.mrb[34].mxu0 }
 0x232   : > { %v5250_v59 = vmul.f32 %v6283_v24, %v7354_v29  ;;  %v6285_v40 = vadd.f32 %v6248_v25, %v6096_v12  ;;  %v5094_v26 = vpop.f32.mrb[35].mxu0 }
 0x233   : > { %v5248_v60 = vmul.f32 %v6284_v58, %v7354_v29  ;;  %v6286_v61 = vadd.f32 %v5094_v26, %v2914_v14 }
 0x234   : > { %v5293_v27 = vadd.f32 %v7359_v32, %v5250_v59  ;;  %v5251_v62 = vmul.f32 %v6285_v40, %v7354_v29 }
 0x235   : > { %v5291_v63 = vadd.f32 %v7359_v32, %v5248_v60  ;;  %v5249_v3 = vmul.f32 %v6286_v61, %v7354_v29 }
 0x236   : > { %5329 = vst [vmem:[%s7365_s18 + $0x110] sm:$0xff] %v5293_v27  ;;  %v5294_v0 = vadd.f32 %v7359_v32, %v5251_v62 }
 0x237   : > { %5327 = vst [vmem:[%s7365_s18 + $0x100] sm:$0xff] %v5291_v63  ;;  %v5292_v38 = vadd.f32 %v7359_v32, %v5249_v3 }
 0x238   : > { %5330 = vst [vmem:[%s7365_s18 + $0x118] sm:$0xff] %v5294_v0 }
 0x239   : > { %5328 = vst [vmem:[%s7365_s18 + $0x108] sm:$0xff] %v5292_v38 }
 0x23a PF: > { %s15_s17 = sadd.s32 1, %s6736_s17  }
 0x23b   : > { %p12_p4 = scmp.ge.s32.totalorder %s15_s17, 4  }
 0x23d   :  { %14 = sbr.rel (!%p12_p4) target bundleno = 2 (0x2), region = 74 }

</bundles_post_ra>
